<compile_context>
chip_gen: v7x
topology: tpu7x:2x2x1
jax: 0.10.0
libtpu: 0.0.40
codegen_flags: <defaults>
</compile_context>

<pallas_src>
import math

import jax
import jax.numpy as jnp
import numpy as np
from jax.experimental import pallas as pl
from jax.experimental.pallas import tpu as pltpu


# ----------------------------------------------------------------------------
# Kernel factory (closes over the static head count).
# ----------------------------------------------------------------------------
def _make_kernel(num_heads):
    H = num_heads

    def kernel(
        q_ref, k_ref, v_ref, mask_ref,            # (B,S,E) f32 / bf16 / bf16, (B,S,S) int8
        wq_ref, wk_ref, wv_ref, wo_ref, bo_ref,   # (E,E) bf16 x4, (1,E) f32
        g1_ref, be1_ref, g2_ref, be2_ref,         # layernorm params (1,E) f32
        w1_ref, b1_ref,                           # FFN linear1: (E,F) bf16, (1,F) f32
        w2_ref, b2_ref,                           # FFN linear2: (F,E) bf16, (1,E) f32
        out_ref,                                  # (B,S,E) f32
    ):
        B, S, E = q_ref.shape
        D = E // H
        BS = B * S
        bf16 = jnp.bfloat16

        # --- full-width QKV projections: (BS, E) @ (E, E), bf16 in / f32 accum ---
        # NOTE: 1/sqrt(D) is already folded into wq_ref (done offline).
        q_bf = q_ref[...].reshape(BS, E).astype(bf16)
        k_bf = k_ref[...].reshape(BS, E)          # already bf16 (cast in wrapper)
        v_bf = v_ref[...].reshape(BS, E)

        Q = jnp.dot(q_bf, wq_ref[...], preferred_element_type=jnp.float32)
        K = jnp.dot(k_bf, wk_ref[...], preferred_element_type=jnp.float32)
        V = jnp.dot(v_bf, wv_ref[...], preferred_element_type=jnp.float32)

        Q3 = Q.reshape(B, S, E).astype(bf16)
        K3 = K.reshape(B, S, E).astype(bf16)
        V3 = V.reshape(B, S, E).astype(bf16)

        # int8 mask -> bool "is masked" once, reused by every head.
        masked = mask_ref[...].astype(jnp.int32) == 0          # (B,S,S)

        # --- per-head attention (batched 3-D einsums over the batch block) ---
        # Slices are static lane slices of width D; lane-aligned whenever
        # D % 128 == 0 (realistic transformer sizes).
        head_out = []
        for h in range(H):
            sl = slice(h * D, (h + 1) * D)
            s = jnp.einsum("bqd,bkd->bqk", Q3[:, :, sl], K3[:, :, sl],
                           preferred_element_type=jnp.float32)   # (B,S,S) f32
            # PyTorch: masked_fill first, then scale; scale folded into Wq is
            # equivalent (exp of either fill value underflows to 0 identically,
            # and a fully-masked row stays uniform either way).
            s = jnp.where(masked, jnp.float32(-1e20), s)
            s = s - jnp.max(s, axis=-1, keepdims=True)
            p = jnp.exp(s)
            p = p * pl.reciprocal(jnp.sum(p, axis=-1, keepdims=True), approx=True)
            head_out.append(
                jnp.einsum("bqk,bkd->bqd", p.astype(bf16), V3[:, :, sl],
                           preferred_element_type=jnp.float32))   # (B,S,D) f32

        # Value-level concat (no scratch, no masked vst) -> single full-width
        # output projection over the concatenated heads.
        att = jnp.concatenate(head_out, axis=-1).reshape(BS, E)
        att = jnp.dot(att.astype(bf16), wo_ref[...],
                      preferred_element_type=jnp.float32) + bo_ref[...]

        def layernorm(x, g, b):
            mu = jnp.mean(x, axis=-1, keepdims=True)
            var = jnp.mean((x - mu) ** 2, axis=-1, keepdims=True)
            return (x - mu) * jax.lax.rsqrt(var + 1e-5) * g + b

        # residual + norm1 (dropout == identity in eval); re-read q_ref here
        # instead of keeping an f32 copy alive across every matmul above.
        x = layernorm(att + q_ref[...].reshape(BS, E).astype(jnp.float32),
                      g1_ref[...], be1_ref[...])

        # feed forward: Linear -> ReLU -> Linear (bf16 matmuls, f32 accum).
        # Hidden activation is cast to bf16 immediately after bias+ReLU so the
        # live (BS, F) temporary is half-size.
        h1 = jnp.dot(x.astype(bf16), w1_ref[...], preferred_element_type=jnp.float32)
        h1 = jnp.maximum(h1 + b1_ref[...], 0.0).astype(bf16)
        ff = jnp.dot(h1, w2_ref[...], preferred_element_type=jnp.float32) + b2_ref[...]

        # residual + norm2
        out = layernorm(ff + x, g2_ref[...], be2_ref[...])
        out_ref[...] = out.reshape(B, S, E).astype(out_ref.dtype)

    return kernel


# ----------------------------------------------------------------------------
# Rough per-grid-step VMEM working-set estimate (bytes).
# ----------------------------------------------------------------------------
def _vmem_need_bytes(b_tile, S, E, F, w_bytes, weight_bufs):
    BS = b_tile * S
    io = 2 * (BS * E * 4          # q block (f32), double-buffered
              + 2 * BS * E * 2    # k, v blocks (bf16)
              + b_tile * S * S    # mask block (int8)
              + BS * E * 4)       # out block (f32)
    tmp = (3 * BS * E * (4 + 2)       # Q/K/V f32 accumulators + bf16 copies
           + 3 * b_tile * S * S * 4   # per-head scores / probs / select temps
           + 2 * BS * E * 4           # concatenated + projected attention
           + BS * F * (4 + 2)         # FFN hidden f32 accumulator + bf16
           + 2 * BS * E * 4)          # layernorm temporaries
    return io + weight_bufs * w_bytes + tmp


# ----------------------------------------------------------------------------
# Wrapper
# ----------------------------------------------------------------------------
def transformer_block(value, key, query, mask, params, num_heads):
    N, S, E = query.shape
    H = num_heads
    F = params["w1T"].shape[1]

    # Halve activation HBM traffic: bf16 K/V (matmuls are bf16-in anyway),
    # int8 mask.  Q stays f32 (it is also the residual / output dtype).
    key_bf = key.astype(jnp.bfloat16)
    value_bf = value.astype(jnp.bfloat16)
    mask_i8 = (mask != 0).astype(jnp.int8)

    weights = (
        params["wqT"], params["wkT"], params["wvT"], params["woT"], params["bo"],
        params["g1"], params["be1"], params["g2"], params["be2"],
        params["w1T"], params["b1"], params["w2T"], params["b2"],
    )
    w_bytes = sum(int(np.prod(w.shape)) * w.dtype.itemsize for w in weights)

    # Per-generation VMEM budget (v7x: 64 MiB, v5e/v6e: 128 MiB physical).
    try:
        vmem_phys = int(pltpu.get_tpu_info().vmem_capacity_bytes)
    except Exception:
        vmem_phys = 64 << 20                       # conservative default
    budget = min(int(0.6 * vmem_phys), 100 << 20)

    # Largest batch block whose working set fits the budget, while keeping at
    # least 2 grid steps on the "parallel" axis (v7x megacore) when possible.
    b_tile = 1
    for d in range(N, 0, -1):
        if N % d:
            continue
        if N >= 2 and N // d < 2:
            continue
        if int(1.5 * _vmem_need_bytes(d, S, E, F, w_bytes, 1)) <= budget:
            b_tile = d
            break
    grid = (N // b_tile,)

    need = _vmem_need_bytes(b_tile, S, E, F, w_bytes, 1)
    vmem_limit = int(min(max(2 * need, 16 << 20), max(budget, 16 << 20)))

    # Cost estimate (helps XLA schedule around the custom call).
    D = E // H
    flops = (2 * N * S * E * E * 4          # QKV + output projections
             + 2 * N * H * S * S * D * 2    # QK^T and PV
             + 2 * N * S * E * F * 2)       # FFN
    bytes_accessed = N * S * E * (4 + 2 + 2 + 4) + N * S * S + w_bytes
    cost = pl.CostEstimate(flops=int(flops),
                           transcendentals=int(N * H * S * S),
                           bytes_accessed=int(bytes_accessed))

    def batch_spec(*trail):
        zeros = (0,) * len(trail)
        return pl.BlockSpec((b_tile,) + trail, lambda n, _z=zeros: (n,) + _z)

    def weight_spec(shape, single_buffer):
        zeros = (0,) * len(shape)
        if single_buffer:
            # Constant block index -> single buffer loses nothing and halves
            # the resident weight footprint (important on v7x's 64 MiB VMEM).
            return pl.BlockSpec(shape, lambda n, _z=zeros: _z,
                                pipeline_mode=pl.Buffered(1))
        return pl.BlockSpec(shape, lambda n, _z=zeros: _z)

    def run(single_buffer_weights):
        in_specs = [batch_spec(S, E), batch_spec(S, E), batch_spec(S, E),
                    batch_spec(S, S)]
        in_specs += [weight_spec(w.shape, single_buffer_weights) for w in weights]
        return pl.pallas_call(
            _make_kernel(H),
            out_shape=jax.ShapeDtypeStruct((N, S, E), query.dtype),
            grid=grid,
            in_specs=in_specs,
            out_specs=batch_spec(S, E),
            compiler_params=pltpu.CompilerParams(
                dimension_semantics=("parallel",),
                vmem_limit_bytes=vmem_limit),
            cost_estimate=cost,
        )(query, key_bf, value_bf, mask_i8, *weights)

    try:
        return run(True)      # single-buffered resident weights
    except Exception:
        return run(False)     # fall back to default double-buffering


# ----------------------------------------------------------------------------
# Deterministic parameter construction (mirrors the nn.Module __init__ shapes).
#   PyTorch nn.Linear: y = x @ W.T + b with W of shape (out, in).
# ----------------------------------------------------------------------------
def make_params(rng, embed_size, heads, forward_expansion):
    E = embed_size
    D = E // heads
    F = forward_expansion * E
    keys = jax.random.split(rng, 12)

    Wq = jax.random.normal(keys[0], (E, E), jnp.float32) * 0.1
    Wk = jax.random.normal(keys[1], (E, E), jnp.float32) * 0.1
    Wv = jax.random.normal(keys[2], (E, E), jnp.float32) * 0.1
    Wo = jax.random.normal(keys[3], (E, E), jnp.float32) * 0.1
    bo = jax.random.normal(keys[4], (E,), jnp.float32) * 0.1
    W1 = jax.random.normal(keys[5], (F, E), jnp.float32) * 0.1
    b1 = jax.random.normal(keys[6], (F,), jnp.float32) * 0.1
    W2 = jax.random.normal(keys[7], (E, F), jnp.float32) * 0.1
    b2 = jax.random.normal(keys[8], (E,), jnp.float32) * 0.1
    g1 = 1.0 + 0.1 * jax.random.normal(keys[9], (E,), jnp.float32)
    be1 = 0.1 * jax.random.normal(keys[10], (E,), jnp.float32)
    g2 = 1.0 + 0.1 * jax.random.normal(keys[11], (E,), jnp.float32)
    be2 = jnp.zeros((E,), jnp.float32)

    # Kernel-side layouts: transposed full-width weights in bf16,
    # 1/sqrt(head_dim) folded into the Q projection; biases/LN params in f32.
    params = dict(
        wqT=(Wq.T * (1.0 / math.sqrt(D))).astype(jnp.bfloat16),
        wkT=Wk.T.astype(jnp.bfloat16),
        wvT=Wv.T.astype(jnp.bfloat16),
        woT=Wo.T.astype(jnp.bfloat16),
        bo=bo.reshape(1, E),
        g1=g1.reshape(1, E), be1=be1.reshape(1, E),
        g2=g2.reshape(1, E), be2=be2.reshape(1, E),
        w1T=W1.T.astype(jnp.bfloat16), b1=b1.reshape(1, F),
        w2T=W2.T.astype(jnp.bfloat16), b2=b2.reshape(1, E),
    )
    raw = dict(Wq=Wq, Wk=Wk, Wv=Wv, Wo=Wo, bo=bo, W1=W1, b1=b1, W2=W2, b2=b2,
               g1=g1, be1=be1, g2=g2, be2=be2)
    return params, raw


# ----------------------------------------------------------------------------
# Pure-JAX f32 reference (mirrors the PyTorch forward exactly).
# ----------------------------------------------------------------------------
def reference_block(value, key, query, mask, raw, heads):
    N, S, E = query.shape
    D = E // heads

    def layernorm(x, g, b):
        mu = jnp.mean(x, axis=-1, keepdims=True)
        var = jnp.mean((x - mu) ** 2, axis=-1, keepdims=True)
        return (x - mu) / jnp.sqrt(var + 1e-5) * g + b

    q = (query @ raw["Wq"].T).reshape(N, S, heads, D)
    k = (key @ raw["Wk"].T).reshape(N, S, heads, D)
    v = (value @ raw["Wv"].T).reshape(N, S, heads, D)
    scores = jnp.einsum("nqhd,nkhd->nhqk", q, k)
    scores = jnp.where(mask[:, None, :, :] == 0.0, -1e20, scores)
    p = jax.nn.softmax(scores / math.sqrt(D), axis=-1)
    att = jnp.einsum("nhqk,nkhd->nqhd", p, v).reshape(N, S, E)
    att = att @ raw["Wo"].T + raw["bo"]

    x = layernorm(att + query, raw["g1"], raw["be1"])
    ff = jnp.maximum(x @ raw["W1"].T + raw["b1"], 0.0) @ raw["W2"].T + raw["b2"]
    return layernorm(ff + x, raw["g2"], raw["be2"])


if __name__ == "__main__":
    N, S, E, H, FE = 2, 8, 32, 4, 4   # batch, seq, embed, heads, forward_expansion

    root = jax.random.PRNGKey(0)
    k_in, k_par = jax.random.split(root)
    kq, kk, kv = jax.random.split(k_in, 3)

    query = jax.random.normal(kq, (N, S, E), jnp.float32)
    key = jax.random.normal(kk, (N, S, E), jnp.float32)
    value = jax.random.normal(kv, (N, S, E), jnp.float32)
    # mask: 1 = keep, 0 = masked (deterministic lower-triangular causal mask)
    mask = jnp.tril(jnp.ones((S, S), jnp.float32))[None].repeat(N, axis=0)

    params, raw = make_params(k_par, E, H, FE)

    out = transformer_block(value, key, query, mask, params, num_heads=H)
    out = jax.block_until_ready(out)

    ref = reference_block(value, key, query, mask, raw, H)
    # bf16 matmuls (f32 accumulation) + approx reciprocal vs f32 reference.
    np.testing.assert_allclose(np.asarray(out), np.asarray(ref), rtol=5e-2, atol=5e-2)

    print("KERNEL_OK")
</pallas_src>

<mosaic_0001>
module attributes {stable_mosaic.version = 11 : i64} {
  func.func @kernel(%arg0: i32, %arg1: memref<1x8x32xf32, #tpu.memory_space<vmem>>, %arg2: memref<1x8x32xbf16, #tpu.memory_space<vmem>>, %arg3: memref<1x8x32xbf16, #tpu.memory_space<vmem>>, %arg4: memref<1x8x8xi8, #tpu.memory_space<vmem>>, %arg5: memref<32x32xbf16, #tpu.memory_space<vmem>>, %arg6: memref<32x32xbf16, #tpu.memory_space<vmem>>, %arg7: memref<32x32xbf16, #tpu.memory_space<vmem>>, %arg8: memref<32x32xbf16, #tpu.memory_space<vmem>>, %arg9: memref<1x32xf32, #tpu.memory_space<vmem>>, %arg10: memref<1x32xf32, #tpu.memory_space<vmem>>, %arg11: memref<1x32xf32, #tpu.memory_space<vmem>>, %arg12: memref<1x32xf32, #tpu.memory_space<vmem>>, %arg13: memref<1x32xf32, #tpu.memory_space<vmem>>, %arg14: memref<32x128xbf16, #tpu.memory_space<vmem>>, %arg15: memref<1x128xf32, #tpu.memory_space<vmem>>, %arg16: memref<128x32xbf16, #tpu.memory_space<vmem>>, %arg17: memref<1x32xf32, #tpu.memory_space<vmem>>, %arg18: memref<1x8x32xf32, #tpu.memory_space<vmem>>) attributes {dimension_semantics = [#tpu.dimension_semantics<parallel>], iteration_bounds = array<i64: 2>, scalar_prefetch = 0 : i64, scratch_operands = 0 : i64, tpu.core_type = #tpu.core_type<tc>, window_params = [{transform_indices = @transform_0, window_bounds = array<i64: 1, 8, 32>}, {transform_indices = @transform_1, window_bounds = array<i64: 1, 8, 32>}, {transform_indices = @transform_2, window_bounds = array<i64: 1, 8, 32>}, {transform_indices = @transform_3, window_bounds = array<i64: 1, 8, 8>}, {pipeline_mode = #tpu.pipeline_mode<synchronous>, transform_indices = @transform_4, window_bounds = array<i64: 32, 32>}, {pipeline_mode = #tpu.pipeline_mode<synchronous>, transform_indices = @transform_5, window_bounds = array<i64: 32, 32>}, {pipeline_mode = #tpu.pipeline_mode<synchronous>, transform_indices = @transform_6, window_bounds = array<i64: 32, 32>}, {pipeline_mode = #tpu.pipeline_mode<synchronous>, transform_indices = @transform_7, window_bounds = array<i64: 32, 32>}, {pipeline_mode = #tpu.pipeline_mode<synchronous>, transform_indices = @transform_8, window_bounds = array<i64: 1, 32>}, {pipeline_mode = #tpu.pipeline_mode<synchronous>, transform_indices = @transform_9, window_bounds = array<i64: 1, 32>}, {pipeline_mode = #tpu.pipeline_mode<synchronous>, transform_indices = @transform_10, window_bounds = array<i64: 1, 32>}, {pipeline_mode = #tpu.pipeline_mode<synchronous>, transform_indices = @transform_11, window_bounds = array<i64: 1, 32>}, {pipeline_mode = #tpu.pipeline_mode<synchronous>, transform_indices = @transform_12, window_bounds = array<i64: 1, 32>}, {pipeline_mode = #tpu.pipeline_mode<synchronous>, transform_indices = @transform_13, window_bounds = array<i64: 32, 128>}, {pipeline_mode = #tpu.pipeline_mode<synchronous>, transform_indices = @transform_14, window_bounds = array<i64: 1, 128>}, {pipeline_mode = #tpu.pipeline_mode<synchronous>, transform_indices = @transform_15, window_bounds = array<i64: 128, 32>}, {pipeline_mode = #tpu.pipeline_mode<synchronous>, transform_indices = @transform_16, window_bounds = array<i64: 1, 32>}, {transform_indices = @transform_17, window_bounds = array<i64: 1, 8, 32>}]} {
    %c0 = arith.constant 0 : index
    %c0_0 = arith.constant 0 : index
    %c0_1 = arith.constant 0 : index
    %0 = vector.load %arg1[%c0, %c0_0, %c0_1] : memref<1x8x32xf32, #tpu.memory_space<vmem>>, vector<1x8x32xf32>
    %1 = vector.shape_cast %0 : vector<1x8x32xf32> to vector<8x32xf32>
    %2 = arith.truncf %1 : vector<8x32xf32> to vector<8x32xbf16>
    %c0_2 = arith.constant 0 : index
    %c0_3 = arith.constant 0 : index
    %c0_4 = arith.constant 0 : index
    %3 = vector.load %arg2[%c0_2, %c0_3, %c0_4] : memref<1x8x32xbf16, #tpu.memory_space<vmem>>, vector<1x8x32xbf16>
    %4 = vector.shape_cast %3 : vector<1x8x32xbf16> to vector<8x32xbf16>
    %c0_5 = arith.constant 0 : index
    %c0_6 = arith.constant 0 : index
    %c0_7 = arith.constant 0 : index
    %5 = vector.load %arg3[%c0_5, %c0_6, %c0_7] : memref<1x8x32xbf16, #tpu.memory_space<vmem>>, vector<1x8x32xbf16>
    %6 = vector.shape_cast %5 : vector<1x8x32xbf16> to vector<8x32xbf16>
    %c0_8 = arith.constant 0 : index
    %c0_9 = arith.constant 0 : index
    %7 = vector.load %arg5[%c0_8, %c0_9] : memref<32x32xbf16, #tpu.memory_space<vmem>>, vector<32x32xbf16>
    %cst = arith.constant dense<0.000000e+00> : vector<8x32xf32>
    %8 = tpu.matmul %2, %7, %cst {dimension_numbers = #tpu.dot_dimension_numbers<[1], [0], [0], [1], [0, 0, 1, 1], [], []>} : vector<8x32xbf16>, vector<32x32xbf16>, vector<8x32xf32> -> vector<8x32xf32>
    %c0_10 = arith.constant 0 : index
    %c0_11 = arith.constant 0 : index
    %9 = vector.load %arg6[%c0_10, %c0_11] : memref<32x32xbf16, #tpu.memory_space<vmem>>, vector<32x32xbf16>
    %cst_12 = arith.constant dense<0.000000e+00> : vector<8x32xf32>
    %10 = tpu.matmul %4, %9, %cst_12 {dimension_numbers = #tpu.dot_dimension_numbers<[1], [0], [0], [1], [0, 0, 1, 1], [], []>} : vector<8x32xbf16>, vector<32x32xbf16>, vector<8x32xf32> -> vector<8x32xf32>
    %c0_13 = arith.constant 0 : index
    %c0_14 = arith.constant 0 : index
    %11 = vector.load %arg7[%c0_13, %c0_14] : memref<32x32xbf16, #tpu.memory_space<vmem>>, vector<32x32xbf16>
    %cst_15 = arith.constant dense<0.000000e+00> : vector<8x32xf32>
    %12 = tpu.matmul %6, %11, %cst_15 {dimension_numbers = #tpu.dot_dimension_numbers<[1], [0], [0], [1], [0, 0, 1, 1], [], []>} : vector<8x32xbf16>, vector<32x32xbf16>, vector<8x32xf32> -> vector<8x32xf32>
    %13 = vector.shape_cast %8 : vector<8x32xf32> to vector<1x8x32xf32>
    %14 = arith.truncf %13 : vector<1x8x32xf32> to vector<1x8x32xbf16>
    %15 = vector.shape_cast %10 : vector<8x32xf32> to vector<1x8x32xf32>
    %16 = arith.truncf %15 : vector<1x8x32xf32> to vector<1x8x32xbf16>
    %17 = vector.shape_cast %12 : vector<8x32xf32> to vector<1x8x32xf32>
    %18 = arith.truncf %17 : vector<1x8x32xf32> to vector<1x8x32xbf16>
    %c0_16 = arith.constant 0 : index
    %c0_17 = arith.constant 0 : index
    %c0_18 = arith.constant 0 : index
    %19 = vector.load %arg4[%c0_16, %c0_17, %c0_18] : memref<1x8x8xi8, #tpu.memory_space<vmem>>, vector<1x8x8xi8>
    %20 = arith.extsi %19 : vector<1x8x8xi8> to vector<1x8x8xi32>
    %c0_i32 = arith.constant 0 : i32
    %21 = vector.broadcast %c0_i32 : i32 to vector<1x8x8xi32>
    %22 = arith.cmpi eq, %20, %21 : vector<1x8x8xi32>
    %23 = vector.extract_strided_slice %14 {offsets = [0, 0, 0], sizes = [1, 8, 8], strides = [1, 1, 1]} : vector<1x8x32xbf16> to vector<1x8x8xbf16>
    %24 = vector.extract_strided_slice %16 {offsets = [0, 0, 0], sizes = [1, 8, 8], strides = [1, 1, 1]} : vector<1x8x32xbf16> to vector<1x8x8xbf16>
    "tpu.trace_start"() <{level = 10 : i32, message = "bqd,bkd->bqk"}> : () -> ()
    %cst_19 = arith.constant dense<0.000000e+00> : vector<1x8x8xf32>
    %25 = tpu.matmul %23, %24, %cst_19 {dimension_numbers = #tpu.dot_dimension_numbers<[2], [2], [1], [1], [0, 0, 0, 1, 1, 1], [0], [0]>} : vector<1x8x8xbf16>, vector<1x8x8xbf16>, vector<1x8x8xf32> -> vector<1x8x8xf32>
    %cst_20 = arith.constant -1.000000e+20 : f32
    "tpu.trace_stop"() : () -> ()
    %26 = vector.broadcast %cst_20 : f32 to vector<1x8x8xf32>
    %27 = arith.select %22, %26, %25 : vector<1x8x8xi1>, vector<1x8x8xf32>
    %cst_21 = arith.constant dense<0xFF800000> : vector<1x8xf32>
    %28 = vector.multi_reduction <maximumf>, %27, %cst_21 [2] : vector<1x8x8xf32> to vector<1x8xf32>
    %29 = vector.shape_cast %28 : vector<1x8xf32> to vector<1x8x1xf32>
    %30 = vector.broadcast %29 : vector<1x8x1xf32> to vector<1x8x8xf32>
    %31 = arith.subf %27, %30 : vector<1x8x8xf32>
    %32 = math.exp %31 : vector<1x8x8xf32>
    %cst_22 = arith.constant dense<0.000000e+00> : vector<1x8xf32>
    %33 = vector.multi_reduction <add>, %32, %cst_22 [2] : vector<1x8x8xf32> to vector<1x8xf32>
    %34 = vector.shape_cast %33 : vector<1x8xf32> to vector<1x8x1xf32>
    %35 = tpu.reciprocal %34 {approx = true} : vector<1x8x1xf32> -> vector<1x8x1xf32>
    %36 = vector.broadcast %35 : vector<1x8x1xf32> to vector<1x8x8xf32>
    %37 = arith.mulf %32, %36 : vector<1x8x8xf32>
    %38 = arith.truncf %37 : vector<1x8x8xf32> to vector<1x8x8xbf16>
    %39 = vector.extract_strided_slice %18 {offsets = [0, 0, 0], sizes = [1, 8, 8], strides = [1, 1, 1]} : vector<1x8x32xbf16> to vector<1x8x8xbf16>
    "tpu.trace_start"() <{level = 10 : i32, message = "bqk,bkd->bqd"}> : () -> ()
    %cst_23 = arith.constant dense<0.000000e+00> : vector<1x8x8xf32>
    %40 = tpu.matmul %38, %39, %cst_23 {dimension_numbers = #tpu.dot_dimension_numbers<[2], [1], [1], [2], [0, 0, 0, 1, 1, 2], [0], [0]>} : vector<1x8x8xbf16>, vector<1x8x8xbf16>, vector<1x8x8xf32> -> vector<1x8x8xf32>
    "tpu.trace_stop"() : () -> ()
    %41 = vector.extract_strided_slice %14 {offsets = [0, 0, 8], sizes = [1, 8, 8], strides = [1, 1, 1]} : vector<1x8x32xbf16> to vector<1x8x8xbf16>
    %42 = vector.extract_strided_slice %16 {offsets = [0, 0, 8], sizes = [1, 8, 8], strides = [1, 1, 1]} : vector<1x8x32xbf16> to vector<1x8x8xbf16>
    "tpu.trace_start"() <{level = 10 : i32, message = "bqd,bkd->bqk"}> : () -> ()
    %cst_24 = arith.constant dense<0.000000e+00> : vector<1x8x8xf32>
    %43 = tpu.matmul %41, %42, %cst_24 {dimension_numbers = #tpu.dot_dimension_numbers<[2], [2], [1], [1], [0, 0, 0, 1, 1, 1], [0], [0]>} : vector<1x8x8xbf16>, vector<1x8x8xbf16>, vector<1x8x8xf32> -> vector<1x8x8xf32>
    %cst_25 = arith.constant -1.000000e+20 : f32
    "tpu.trace_stop"() : () -> ()
    %44 = vector.broadcast %cst_25 : f32 to vector<1x8x8xf32>
    %45 = arith.select %22, %44, %43 : vector<1x8x8xi1>, vector<1x8x8xf32>
    %cst_26 = arith.constant dense<0xFF800000> : vector<1x8xf32>
    %46 = vector.multi_reduction <maximumf>, %45, %cst_26 [2] : vector<1x8x8xf32> to vector<1x8xf32>
    %47 = vector.shape_cast %46 : vector<1x8xf32> to vector<1x8x1xf32>
    %48 = vector.broadcast %47 : vector<1x8x1xf32> to vector<1x8x8xf32>
    %49 = arith.subf %45, %48 : vector<1x8x8xf32>
    %50 = math.exp %49 : vector<1x8x8xf32>
    %cst_27 = arith.constant dense<0.000000e+00> : vector<1x8xf32>
    %51 = vector.multi_reduction <add>, %50, %cst_27 [2] : vector<1x8x8xf32> to vector<1x8xf32>
    %52 = vector.shape_cast %51 : vector<1x8xf32> to vector<1x8x1xf32>
    %53 = tpu.reciprocal %52 {approx = true} : vector<1x8x1xf32> -> vector<1x8x1xf32>
    %54 = vector.broadcast %53 : vector<1x8x1xf32> to vector<1x8x8xf32>
    %55 = arith.mulf %50, %54 : vector<1x8x8xf32>
    %56 = arith.truncf %55 : vector<1x8x8xf32> to vector<1x8x8xbf16>
    %57 = vector.extract_strided_slice %18 {offsets = [0, 0, 8], sizes = [1, 8, 8], strides = [1, 1, 1]} : vector<1x8x32xbf16> to vector<1x8x8xbf16>
    "tpu.trace_start"() <{level = 10 : i32, message = "bqk,bkd->bqd"}> : () -> ()
    %cst_28 = arith.constant dense<0.000000e+00> : vector<1x8x8xf32>
    %58 = tpu.matmul %56, %57, %cst_28 {dimension_numbers = #tpu.dot_dimension_numbers<[2], [1], [1], [2], [0, 0, 0, 1, 1, 2], [0], [0]>} : vector<1x8x8xbf16>, vector<1x8x8xbf16>, vector<1x8x8xf32> -> vector<1x8x8xf32>
    "tpu.trace_stop"() : () -> ()
    %59 = vector.extract_strided_slice %14 {offsets = [0, 0, 16], sizes = [1, 8, 8], strides = [1, 1, 1]} : vector<1x8x32xbf16> to vector<1x8x8xbf16>
    %60 = vector.extract_strided_slice %16 {offsets = [0, 0, 16], sizes = [1, 8, 8], strides = [1, 1, 1]} : vector<1x8x32xbf16> to vector<1x8x8xbf16>
    "tpu.trace_start"() <{level = 10 : i32, message = "bqd,bkd->bqk"}> : () -> ()
    %cst_29 = arith.constant dense<0.000000e+00> : vector<1x8x8xf32>
    %61 = tpu.matmul %59, %60, %cst_29 {dimension_numbers = #tpu.dot_dimension_numbers<[2], [2], [1], [1], [0, 0, 0, 1, 1, 1], [0], [0]>} : vector<1x8x8xbf16>, vector<1x8x8xbf16>, vector<1x8x8xf32> -> vector<1x8x8xf32>
    %cst_30 = arith.constant -1.000000e+20 : f32
    "tpu.trace_stop"() : () -> ()
    %62 = vector.broadcast %cst_30 : f32 to vector<1x8x8xf32>
    %63 = arith.select %22, %62, %61 : vector<1x8x8xi1>, vector<1x8x8xf32>
    %cst_31 = arith.constant dense<0xFF800000> : vector<1x8xf32>
    %64 = vector.multi_reduction <maximumf>, %63, %cst_31 [2] : vector<1x8x8xf32> to vector<1x8xf32>
    %65 = vector.shape_cast %64 : vector<1x8xf32> to vector<1x8x1xf32>
    %66 = vector.broadcast %65 : vector<1x8x1xf32> to vector<1x8x8xf32>
    %67 = arith.subf %63, %66 : vector<1x8x8xf32>
    %68 = math.exp %67 : vector<1x8x8xf32>
    %cst_32 = arith.constant dense<0.000000e+00> : vector<1x8xf32>
    %69 = vector.multi_reduction <add>, %68, %cst_32 [2] : vector<1x8x8xf32> to vector<1x8xf32>
    %70 = vector.shape_cast %69 : vector<1x8xf32> to vector<1x8x1xf32>
    %71 = tpu.reciprocal %70 {approx = true} : vector<1x8x1xf32> -> vector<1x8x1xf32>
    %72 = vector.broadcast %71 : vector<1x8x1xf32> to vector<1x8x8xf32>
    %73 = arith.mulf %68, %72 : vector<1x8x8xf32>
    %74 = arith.truncf %73 : vector<1x8x8xf32> to vector<1x8x8xbf16>
    %75 = vector.extract_strided_slice %18 {offsets = [0, 0, 16], sizes = [1, 8, 8], strides = [1, 1, 1]} : vector<1x8x32xbf16> to vector<1x8x8xbf16>
    "tpu.trace_start"() <{level = 10 : i32, message = "bqk,bkd->bqd"}> : () -> ()
    %cst_33 = arith.constant dense<0.000000e+00> : vector<1x8x8xf32>
    %76 = tpu.matmul %74, %75, %cst_33 {dimension_numbers = #tpu.dot_dimension_numbers<[2], [1], [1], [2], [0, 0, 0, 1, 1, 2], [0], [0]>} : vector<1x8x8xbf16>, vector<1x8x8xbf16>, vector<1x8x8xf32> -> vector<1x8x8xf32>
    "tpu.trace_stop"() : () -> ()
    %77 = vector.extract_strided_slice %14 {offsets = [0, 0, 24], sizes = [1, 8, 8], strides = [1, 1, 1]} : vector<1x8x32xbf16> to vector<1x8x8xbf16>
    %78 = vector.extract_strided_slice %16 {offsets = [0, 0, 24], sizes = [1, 8, 8], strides = [1, 1, 1]} : vector<1x8x32xbf16> to vector<1x8x8xbf16>
    "tpu.trace_start"() <{level = 10 : i32, message = "bqd,bkd->bqk"}> : () -> ()
    %cst_34 = arith.constant dense<0.000000e+00> : vector<1x8x8xf32>
    %79 = tpu.matmul %77, %78, %cst_34 {dimension_numbers = #tpu.dot_dimension_numbers<[2], [2], [1], [1], [0, 0, 0, 1, 1, 1], [0], [0]>} : vector<1x8x8xbf16>, vector<1x8x8xbf16>, vector<1x8x8xf32> -> vector<1x8x8xf32>
    %cst_35 = arith.constant -1.000000e+20 : f32
    "tpu.trace_stop"() : () -> ()
    %80 = vector.broadcast %cst_35 : f32 to vector<1x8x8xf32>
    %81 = arith.select %22, %80, %79 : vector<1x8x8xi1>, vector<1x8x8xf32>
    %cst_36 = arith.constant dense<0xFF800000> : vector<1x8xf32>
    %82 = vector.multi_reduction <maximumf>, %81, %cst_36 [2] : vector<1x8x8xf32> to vector<1x8xf32>
    %83 = vector.shape_cast %82 : vector<1x8xf32> to vector<1x8x1xf32>
    %84 = vector.broadcast %83 : vector<1x8x1xf32> to vector<1x8x8xf32>
    %85 = arith.subf %81, %84 : vector<1x8x8xf32>
    %86 = math.exp %85 : vector<1x8x8xf32>
    %cst_37 = arith.constant dense<0.000000e+00> : vector<1x8xf32>
    %87 = vector.multi_reduction <add>, %86, %cst_37 [2] : vector<1x8x8xf32> to vector<1x8xf32>
    %88 = vector.shape_cast %87 : vector<1x8xf32> to vector<1x8x1xf32>
    %89 = tpu.reciprocal %88 {approx = true} : vector<1x8x1xf32> -> vector<1x8x1xf32>
    %90 = vector.broadcast %89 : vector<1x8x1xf32> to vector<1x8x8xf32>
    %91 = arith.mulf %86, %90 : vector<1x8x8xf32>
    %92 = arith.truncf %91 : vector<1x8x8xf32> to vector<1x8x8xbf16>
    %93 = vector.extract_strided_slice %18 {offsets = [0, 0, 24], sizes = [1, 8, 8], strides = [1, 1, 1]} : vector<1x8x32xbf16> to vector<1x8x8xbf16>
    "tpu.trace_start"() <{level = 10 : i32, message = "bqk,bkd->bqd"}> : () -> ()
    %cst_38 = arith.constant dense<0.000000e+00> : vector<1x8x8xf32>
    %94 = tpu.matmul %92, %93, %cst_38 {dimension_numbers = #tpu.dot_dimension_numbers<[2], [1], [1], [2], [0, 0, 0, 1, 1, 2], [0], [0]>} : vector<1x8x8xbf16>, vector<1x8x8xbf16>, vector<1x8x8xf32> -> vector<1x8x8xf32>
    "tpu.trace_stop"() : () -> ()
    %95 = tpu.concatenate %40, %58, %76, %94 in 2 : vector<1x8x8xf32>, vector<1x8x8xf32>, vector<1x8x8xf32>, vector<1x8x8xf32> -> vector<1x8x32xf32>
    %96 = vector.shape_cast %95 : vector<1x8x32xf32> to vector<8x32xf32>
    %97 = arith.truncf %96 : vector<8x32xf32> to vector<8x32xbf16>
    %c0_39 = arith.constant 0 : index
    %c0_40 = arith.constant 0 : index
    %98 = vector.load %arg8[%c0_39, %c0_40] : memref<32x32xbf16, #tpu.memory_space<vmem>>, vector<32x32xbf16>
    %cst_41 = arith.constant dense<0.000000e+00> : vector<8x32xf32>
    %99 = tpu.matmul %97, %98, %cst_41 {dimension_numbers = #tpu.dot_dimension_numbers<[1], [0], [0], [1], [0, 0, 1, 1], [], []>} : vector<8x32xbf16>, vector<32x32xbf16>, vector<8x32xf32> -> vector<8x32xf32>
    %c0_42 = arith.constant 0 : index
    %c0_43 = arith.constant 0 : index
    %100 = vector.load %arg9[%c0_42, %c0_43] : memref<1x32xf32, #tpu.memory_space<vmem>>, vector<1x32xf32>
    %101 = vector.broadcast %100 : vector<1x32xf32> to vector<8x32xf32>
    %102 = arith.addf %99, %101 : vector<8x32xf32>
    %c0_44 = arith.constant 0 : index
    %c0_45 = arith.constant 0 : index
    %c0_46 = arith.constant 0 : index
    %103 = vector.load %arg1[%c0_44, %c0_45, %c0_46] : memref<1x8x32xf32, #tpu.memory_space<vmem>>, vector<1x8x32xf32>
    %104 = vector.shape_cast %103 : vector<1x8x32xf32> to vector<8x32xf32>
    %105 = arith.addf %102, %104 : vector<8x32xf32>
    %c0_47 = arith.constant 0 : index
    %c0_48 = arith.constant 0 : index
    %106 = vector.load %arg10[%c0_47, %c0_48] : memref<1x32xf32, #tpu.memory_space<vmem>>, vector<1x32xf32>
    %c0_49 = arith.constant 0 : index
    %c0_50 = arith.constant 0 : index
    %107 = vector.load %arg11[%c0_49, %c0_50] : memref<1x32xf32, #tpu.memory_space<vmem>>, vector<1x32xf32>
    %cst_51 = arith.constant dense<0.000000e+00> : vector<8xf32>
    %108 = vector.multi_reduction <add>, %105, %cst_51 [1] : vector<8x32xf32> to vector<8xf32>
    %109 = vector.shape_cast %108 : vector<8xf32> to vector<8x1xf32>
    %cst_52 = arith.constant 3.200000e+01 : f32
    %110 = vector.broadcast %cst_52 : f32 to vector<8x1xf32>
    %111 = arith.divf %109, %110 : vector<8x1xf32>
    %112 = vector.broadcast %111 : vector<8x1xf32> to vector<8x32xf32>
    %113 = arith.subf %105, %112 : vector<8x32xf32>
    %114 = arith.mulf %113, %113 : vector<8x32xf32>
    %cst_53 = arith.constant dense<0.000000e+00> : vector<8xf32>
    %115 = vector.multi_reduction <add>, %114, %cst_53 [1] : vector<8x32xf32> to vector<8xf32>
    %116 = vector.shape_cast %115 : vector<8xf32> to vector<8x1xf32>
    %cst_54 = arith.constant 3.200000e+01 : f32
    %117 = vector.broadcast %cst_54 : f32 to vector<8x1xf32>
    %118 = arith.divf %116, %117 : vector<8x1xf32>
    %119 = vector.broadcast %111 : vector<8x1xf32> to vector<8x32xf32>
    %120 = arith.subf %105, %119 : vector<8x32xf32>
    %cst_55 = arith.constant 9.99999974E-6 : f32
    %121 = vector.broadcast %cst_55 : f32 to vector<8x1xf32>
    %122 = arith.addf %118, %121 : vector<8x1xf32>
    %123 = math.rsqrt %122 : vector<8x1xf32>
    %124 = vector.broadcast %123 : vector<8x1xf32> to vector<8x32xf32>
    %125 = arith.mulf %120, %124 : vector<8x32xf32>
    %126 = vector.broadcast %106 : vector<1x32xf32> to vector<8x32xf32>
    %127 = arith.mulf %125, %126 : vector<8x32xf32>
    %128 = vector.broadcast %107 : vector<1x32xf32> to vector<8x32xf32>
    %129 = arith.addf %127, %128 : vector<8x32xf32>
    %130 = arith.truncf %129 : vector<8x32xf32> to vector<8x32xbf16>
    %c0_56 = arith.constant 0 : index
    %c0_57 = arith.constant 0 : index
    %131 = vector.load %arg14[%c0_56, %c0_57] : memref<32x128xbf16, #tpu.memory_space<vmem>>, vector<32x128xbf16>
    %cst_58 = arith.constant dense<0.000000e+00> : vector<8x128xf32>
    %132 = tpu.matmul %130, %131, %cst_58 {dimension_numbers = #tpu.dot_dimension_numbers<[1], [0], [0], [1], [0, 0, 1, 1], [], []>} : vector<8x32xbf16>, vector<32x128xbf16>, vector<8x128xf32> -> vector<8x128xf32>
    %c0_59 = arith.constant 0 : index
    %c0_60 = arith.constant 0 : index
    %133 = vector.load %arg15[%c0_59, %c0_60] : memref<1x128xf32, #tpu.memory_space<vmem>>, vector<1x128xf32>
    %134 = vector.broadcast %133 : vector<1x128xf32> to vector<8x128xf32>
    %135 = arith.addf %132, %134 : vector<8x128xf32>
    %cst_61 = arith.constant 0.000000e+00 : f32
    %136 = vector.broadcast %cst_61 : f32 to vector<8x128xf32>
    %137 = arith.maximumf %135, %136 : vector<8x128xf32>
    %138 = arith.truncf %137 : vector<8x128xf32> to vector<8x128xbf16>
    %c0_62 = arith.constant 0 : index
    %c0_63 = arith.constant 0 : index
    %139 = vector.load %arg16[%c0_62, %c0_63] : memref<128x32xbf16, #tpu.memory_space<vmem>>, vector<128x32xbf16>
    %cst_64 = arith.constant dense<0.000000e+00> : vector<8x32xf32>
    %140 = tpu.matmul %138, %139, %cst_64 {dimension_numbers = #tpu.dot_dimension_numbers<[1], [0], [0], [1], [0, 0, 1, 1], [], []>} : vector<8x128xbf16>, vector<128x32xbf16>, vector<8x32xf32> -> vector<8x32xf32>
    %c0_65 = arith.constant 0 : index
    %c0_66 = arith.constant 0 : index
    %141 = vector.load %arg17[%c0_65, %c0_66] : memref<1x32xf32, #tpu.memory_space<vmem>>, vector<1x32xf32>
    %142 = vector.broadcast %141 : vector<1x32xf32> to vector<8x32xf32>
    %143 = arith.addf %140, %142 : vector<8x32xf32>
    %144 = arith.addf %143, %129 : vector<8x32xf32>
    %c0_67 = arith.constant 0 : index
    %c0_68 = arith.constant 0 : index
    %145 = vector.load %arg12[%c0_67, %c0_68] : memref<1x32xf32, #tpu.memory_space<vmem>>, vector<1x32xf32>
    %c0_69 = arith.constant 0 : index
    %c0_70 = arith.constant 0 : index
    %146 = vector.load %arg13[%c0_69, %c0_70] : memref<1x32xf32, #tpu.memory_space<vmem>>, vector<1x32xf32>
    %cst_71 = arith.constant dense<0.000000e+00> : vector<8xf32>
    %147 = vector.multi_reduction <add>, %144, %cst_71 [1] : vector<8x32xf32> to vector<8xf32>
    %148 = vector.shape_cast %147 : vector<8xf32> to vector<8x1xf32>
    %cst_72 = arith.constant 3.200000e+01 : f32
    %149 = vector.broadcast %cst_72 : f32 to vector<8x1xf32>
    %150 = arith.divf %148, %149 : vector<8x1xf32>
    %151 = vector.broadcast %150 : vector<8x1xf32> to vector<8x32xf32>
    %152 = arith.subf %144, %151 : vector<8x32xf32>
    %153 = arith.mulf %152, %152 : vector<8x32xf32>
    %cst_73 = arith.constant dense<0.000000e+00> : vector<8xf32>
    %154 = vector.multi_reduction <add>, %153, %cst_73 [1] : vector<8x32xf32> to vector<8xf32>
    %155 = vector.shape_cast %154 : vector<8xf32> to vector<8x1xf32>
    %cst_74 = arith.constant 3.200000e+01 : f32
    %156 = vector.broadcast %cst_74 : f32 to vector<8x1xf32>
    %157 = arith.divf %155, %156 : vector<8x1xf32>
    %158 = vector.broadcast %150 : vector<8x1xf32> to vector<8x32xf32>
    %159 = arith.subf %144, %158 : vector<8x32xf32>
    %cst_75 = arith.constant 9.99999974E-6 : f32
    %160 = vector.broadcast %cst_75 : f32 to vector<8x1xf32>
    %161 = arith.addf %157, %160 : vector<8x1xf32>
    %162 = math.rsqrt %161 : vector<8x1xf32>
    %163 = vector.broadcast %162 : vector<8x1xf32> to vector<8x32xf32>
    %164 = arith.mulf %159, %163 : vector<8x32xf32>
    %165 = vector.broadcast %145 : vector<1x32xf32> to vector<8x32xf32>
    %166 = arith.mulf %164, %165 : vector<8x32xf32>
    %167 = vector.broadcast %146 : vector<1x32xf32> to vector<8x32xf32>
    %168 = arith.addf %166, %167 : vector<8x32xf32>
    %169 = vector.shape_cast %168 : vector<8x32xf32> to vector<1x8x32xf32>
    %c0_76 = arith.constant 0 : index
    %c0_77 = arith.constant 0 : index
    %c0_78 = arith.constant 0 : index
    %170 = vector.load %arg18[%c0_76, %c0_77, %c0_78] : memref<1x8x32xf32, #tpu.memory_space<vmem>>, vector<1x8x32xf32>
    tpu.vector_store %arg18[%c0_76, %c0_77, %c0_78], %169 {strides = array<i32>} : memref<1x8x32xf32, #tpu.memory_space<vmem>>, vector<1x8x32xf32>,
    return
  }
  func.func @transform_0(%arg0: i32) -> (i32, i32, i32) {
    %c0_i32 = arith.constant 0 : i32
    %c0_i32_0 = arith.constant 0 : i32
    %c0_i32_1 = arith.constant 0 : i32
    return %arg0, %c0_i32, %c0_i32_0 : i32, i32, i32
  }
  func.func @transform_1(%arg0: i32) -> (i32, i32, i32) {
    %c0_i32 = arith.constant 0 : i32
    %c0_i32_0 = arith.constant 0 : i32
    %c0_i32_1 = arith.constant 0 : i32
    return %arg0, %c0_i32, %c0_i32_0 : i32, i32, i32
  }
  func.func @transform_2(%arg0: i32) -> (i32, i32, i32) {
    %c0_i32 = arith.constant 0 : i32
    %c0_i32_0 = arith.constant 0 : i32
    %c0_i32_1 = arith.constant 0 : i32
    return %arg0, %c0_i32, %c0_i32_0 : i32, i32, i32
  }
  func.func @transform_3(%arg0: i32) -> (i32, i32, i32) {
    %c0_i32 = arith.constant 0 : i32
    %c0_i32_0 = arith.constant 0 : i32
    %c0_i32_1 = arith.constant 0 : i32
    return %arg0, %c0_i32, %c0_i32_0 : i32, i32, i32
  }
  func.func @transform_4(%arg0: i32) -> (i32, i32) {
    %c0_i32 = arith.constant 0 : i32
    %c0_i32_0 = arith.constant 0 : i32
    %c0_i32_1 = arith.constant 0 : i32
    return %c0_i32, %c0_i32_0 : i32, i32
  }
  func.func @transform_5(%arg0: i32) -> (i32, i32) {
    %c0_i32 = arith.constant 0 : i32
    %c0_i32_0 = arith.constant 0 : i32
    %c0_i32_1 = arith.constant 0 : i32
    return %c0_i32, %c0_i32_0 : i32, i32
  }
  func.func @transform_6(%arg0: i32) -> (i32, i32) {
    %c0_i32 = arith.constant 0 : i32
    %c0_i32_0 = arith.constant 0 : i32
    %c0_i32_1 = arith.constant 0 : i32
    return %c0_i32, %c0_i32_0 : i32, i32
  }
  func.func @transform_7(%arg0: i32) -> (i32, i32) {
    %c0_i32 = arith.constant 0 : i32
    %c0_i32_0 = arith.constant 0 : i32
    %c0_i32_1 = arith.constant 0 : i32
    return %c0_i32, %c0_i32_0 : i32, i32
  }
  func.func @transform_8(%arg0: i32) -> (i32, i32) {
    %c0_i32 = arith.constant 0 : i32
    %c0_i32_0 = arith.constant 0 : i32
    %c0_i32_1 = arith.constant 0 : i32
    return %c0_i32, %c0_i32_0 : i32, i32
  }
  func.func @transform_9(%arg0: i32) -> (i32, i32) {
    %c0_i32 = arith.constant 0 : i32
    %c0_i32_0 = arith.constant 0 : i32
    %c0_i32_1 = arith.constant 0 : i32
    return %c0_i32, %c0_i32_0 : i32, i32
  }
  func.func @transform_10(%arg0: i32) -> (i32, i32) {
    %c0_i32 = arith.constant 0 : i32
    %c0_i32_0 = arith.constant 0 : i32
    %c0_i32_1 = arith.constant 0 : i32
    return %c0_i32, %c0_i32_0 : i32, i32
  }
  func.func @transform_11(%arg0: i32) -> (i32, i32) {
    %c0_i32 = arith.constant 0 : i32
    %c0_i32_0 = arith.constant 0 : i32
    %c0_i32_1 = arith.constant 0 : i32
    return %c0_i32, %c0_i32_0 : i32, i32
  }
  func.func @transform_12(%arg0: i32) -> (i32, i32) {
    %c0_i32 = arith.constant 0 : i32
    %c0_i32_0 = arith.constant 0 : i32
    %c0_i32_1 = arith.constant 0 : i32
    return %c0_i32, %c0_i32_0 : i32, i32
  }
  func.func @transform_13(%arg0: i32) -> (i32, i32) {
    %c0_i32 = arith.constant 0 : i32
    %c0_i32_0 = arith.constant 0 : i32
    %c0_i32_1 = arith.constant 0 : i32
    return %c0_i32, %c0_i32_0 : i32, i32
  }
  func.func @transform_14(%arg0: i32) -> (i32, i32) {
    %c0_i32 = arith.constant 0 : i32
    %c0_i32_0 = arith.constant 0 : i32
    %c0_i32_1 = arith.constant 0 : i32
    return %c0_i32, %c0_i32_0 : i32, i32
  }
  func.func @transform_15(%arg0: i32) -> (i32, i32) {
    %c0_i32 = arith.constant 0 : i32
    %c0_i32_0 = arith.constant 0 : i32
    %c0_i32_1 = arith.constant 0 : i32
    return %c0_i32, %c0_i32_0 : i32, i32
  }
  func.func @transform_16(%arg0: i32) -> (i32, i32) {
    %c0_i32 = arith.constant 0 : i32
    %c0_i32_0 = arith.constant 0 : i32
    %c0_i32_1 = arith.constant 0 : i32
    return %c0_i32, %c0_i32_0 : i32, i32
  }
  func.func @transform_17(%arg0: i32) -> (i32, i32, i32) {
    %c0_i32 = arith.constant 0 : i32
    %c0_i32_0 = arith.constant 0 : i32
    %c0_i32_1 = arith.constant 0 : i32
    return %arg0, %c0_i32, %c0_i32_0 : i32, i32, i32
  }
}

module attributes {stable_mosaic.version = 11 : i64} {
  func.func @kernel(%arg0: i32, %arg1: memref<1x8x32xf32, #tpu.memory_space<vmem>>, %arg2: memref<1x8x32xbf16, #tpu.memory_space<vmem>>, %arg3: memref<1x8x32xbf16, #tpu.memory_space<vmem>>, %arg4: memref<1x8x8xi8, #tpu.memory_space<vmem>>, %arg5: memref<32x32xbf16, #tpu.memory_space<vmem>>, %arg6: memref<32x32xbf16, #tpu.memory_space<vmem>>, %arg7: memref<32x32xbf16, #tpu.memory_space<vmem>>, %arg8: memref<32x32xbf16, #tpu.memory_space<vmem>>, %arg9: memref<1x32xf32, #tpu.memory_space<vmem>>, %arg10: memref<1x32xf32, #tpu.memory_space<vmem>>, %arg11: memref<1x32xf32, #tpu.memory_space<vmem>>, %arg12: memref<1x32xf32, #tpu.memory_space<vmem>>, %arg13: memref<1x32xf32, #tpu.memory_space<vmem>>, %arg14: memref<32x128xbf16, #tpu.memory_space<vmem>>, %arg15: memref<1x128xf32, #tpu.memory_space<vmem>>, %arg16: memref<128x32xbf16, #tpu.memory_space<vmem>>, %arg17: memref<1x32xf32, #tpu.memory_space<vmem>>, %arg18: memref<1x8x32xf32, #tpu.memory_space<vmem>>) attributes {dimension_semantics = [#tpu.dimension_semantics<parallel>], iteration_bounds = array<i64: 2>, scalar_prefetch = 0 : i64, scratch_operands = 0 : i64, tpu.core_type = #tpu.core_type<tc>, window_params = [{transform_indices = @transform_0, window_bounds = array<i64: 1, 8, 32>}, {transform_indices = @transform_1, window_bounds = array<i64: 1, 8, 32>}, {transform_indices = @transform_2, window_bounds = array<i64: 1, 8, 32>}, {transform_indices = @transform_3, window_bounds = array<i64: 1, 8, 8>}, {pipeline_mode = #tpu.pipeline_mode<synchronous>, transform_indices = @transform_4, window_bounds = array<i64: 32, 32>}, {pipeline_mode = #tpu.pipeline_mode<synchronous>, transform_indices = @transform_5, window_bounds = array<i64: 32, 32>}, {pipeline_mode = #tpu.pipeline_mode<synchronous>, transform_indices = @transform_6, window_bounds = array<i64: 32, 32>}, {pipeline_mode = #tpu.pipeline_mode<synchronous>, transform_indices = @transform_7, window_bounds = array<i64: 32, 32>}, {pipeline_mode = #tpu.pipeline_mode<synchronous>, transform_indices = @transform_8, window_bounds = array<i64: 1, 32>}, {pipeline_mode = #tpu.pipeline_mode<synchronous>, transform_indices = @transform_9, window_bounds = array<i64: 1, 32>}, {pipeline_mode = #tpu.pipeline_mode<synchronous>, transform_indices = @transform_10, window_bounds = array<i64: 1, 32>}, {pipeline_mode = #tpu.pipeline_mode<synchronous>, transform_indices = @transform_11, window_bounds = array<i64: 1, 32>}, {pipeline_mode = #tpu.pipeline_mode<synchronous>, transform_indices = @transform_12, window_bounds = array<i64: 1, 32>}, {pipeline_mode = #tpu.pipeline_mode<synchronous>, transform_indices = @transform_13, window_bounds = array<i64: 32, 128>}, {pipeline_mode = #tpu.pipeline_mode<synchronous>, transform_indices = @transform_14, window_bounds = array<i64: 1, 128>}, {pipeline_mode = #tpu.pipeline_mode<synchronous>, transform_indices = @transform_15, window_bounds = array<i64: 128, 32>}, {pipeline_mode = #tpu.pipeline_mode<synchronous>, transform_indices = @transform_16, window_bounds = array<i64: 1, 32>}, {transform_indices = @transform_17, window_bounds = array<i64: 1, 8, 32>}]} {
    %c0 = arith.constant 0 : index
    %c0_0 = arith.constant 0 : index
    %c0_1 = arith.constant 0 : index
    %0 = vector.load %arg1[%c0, %c0_0, %c0_1] : memref<1x8x32xf32, #tpu.memory_space<vmem>>, vector<1x8x32xf32>
    %1 = vector.shape_cast %0 : vector<1x8x32xf32> to vector<8x32xf32>
    %2 = arith.truncf %1 : vector<8x32xf32> to vector<8x32xbf16>
    %c0_2 = arith.constant 0 : index
    %c0_3 = arith.constant 0 : index
    %c0_4 = arith.constant 0 : index
    %3 = vector.load %arg2[%c0_2, %c0_3, %c0_4] : memref<1x8x32xbf16, #tpu.memory_space<vmem>>, vector<1x8x32xbf16>
    %4 = vector.shape_cast %3 : vector<1x8x32xbf16> to vector<8x32xbf16>
    %c0_5 = arith.constant 0 : index
    %c0_6 = arith.constant 0 : index
    %c0_7 = arith.constant 0 : index
    %5 = vector.load %arg3[%c0_5, %c0_6, %c0_7] : memref<1x8x32xbf16, #tpu.memory_space<vmem>>, vector<1x8x32xbf16>
    %6 = vector.shape_cast %5 : vector<1x8x32xbf16> to vector<8x32xbf16>
    %c0_8 = arith.constant 0 : index
    %c0_9 = arith.constant 0 : index
    %7 = vector.load %arg5[%c0_8, %c0_9] : memref<32x32xbf16, #tpu.memory_space<vmem>>, vector<32x32xbf16>
    %cst = arith.constant dense<0.000000e+00> : vector<8x32xf32>
    %8 = tpu.matmul %2, %7, %cst {dimension_numbers = #tpu.dot_dimension_numbers<[1], [0], [0], [1], [0, 0, 1, 1], [], []>} : vector<8x32xbf16>, vector<32x32xbf16>, vector<8x32xf32> -> vector<8x32xf32>
    %c0_10 = arith.constant 0 : index
    %c0_11 = arith.constant 0 : index
    %9 = vector.load %arg6[%c0_10, %c0_11] : memref<32x32xbf16, #tpu.memory_space<vmem>>, vector<32x32xbf16>
    %cst_12 = arith.constant dense<0.000000e+00> : vector<8x32xf32>
    %10 = tpu.matmul %4, %9, %cst_12 {dimension_numbers = #tpu.dot_dimension_numbers<[1], [0], [0], [1], [0, 0, 1, 1], [], []>} : vector<8x32xbf16>, vector<32x32xbf16>, vector<8x32xf32> -> vector<8x32xf32>
    %c0_13 = arith.constant 0 : index
    %c0_14 = arith.constant 0 : index
    %11 = vector.load %arg7[%c0_13, %c0_14] : memref<32x32xbf16, #tpu.memory_space<vmem>>, vector<32x32xbf16>
    %cst_15 = arith.constant dense<0.000000e+00> : vector<8x32xf32>
    %12 = tpu.matmul %6, %11, %cst_15 {dimension_numbers = #tpu.dot_dimension_numbers<[1], [0], [0], [1], [0, 0, 1, 1], [], []>} : vector<8x32xbf16>, vector<32x32xbf16>, vector<8x32xf32> -> vector<8x32xf32>
    %13 = vector.shape_cast %8 : vector<8x32xf32> to vector<1x8x32xf32>
    %14 = arith.truncf %13 : vector<1x8x32xf32> to vector<1x8x32xbf16>
    %15 = vector.shape_cast %10 : vector<8x32xf32> to vector<1x8x32xf32>
    %16 = arith.truncf %15 : vector<1x8x32xf32> to vector<1x8x32xbf16>
    %17 = vector.shape_cast %12 : vector<8x32xf32> to vector<1x8x32xf32>
    %18 = arith.truncf %17 : vector<1x8x32xf32> to vector<1x8x32xbf16>
    %c0_16 = arith.constant 0 : index
    %c0_17 = arith.constant 0 : index
    %c0_18 = arith.constant 0 : index
    %19 = vector.load %arg4[%c0_16, %c0_17, %c0_18] : memref<1x8x8xi8, #tpu.memory_space<vmem>>, vector<1x8x8xi8>
    %20 = arith.extsi %19 : vector<1x8x8xi8> to vector<1x8x8xi32>
    %c0_i32 = arith.constant 0 : i32
    %21 = vector.broadcast %c0_i32 : i32 to vector<1x8x8xi32>
    %22 = arith.cmpi eq, %20, %21 : vector<1x8x8xi32>
    %23 = vector.extract_strided_slice %14 {offsets = [0, 0, 0], sizes = [1, 8, 8], strides = [1, 1, 1]} : vector<1x8x32xbf16> to vector<1x8x8xbf16>
    %24 = vector.extract_strided_slice %16 {offsets = [0, 0, 0], sizes = [1, 8, 8], strides = [1, 1, 1]} : vector<1x8x32xbf16> to vector<1x8x8xbf16>
    "tpu.trace_start"() <{level = 10 : i32, message = "bqd,bkd->bqk"}> : () -> ()
    %cst_19 = arith.constant dense<0.000000e+00> : vector<1x8x8xf32>
    %25 = tpu.matmul %23, %24, %cst_19 {dimension_numbers = #tpu.dot_dimension_numbers<[2], [2], [1], [1], [0, 0, 0, 1, 1, 1], [0], [0]>} : vector<1x8x8xbf16>, vector<1x8x8xbf16>, vector<1x8x8xf32> -> vector<1x8x8xf32>
    %cst_20 = arith.constant -1.000000e+20 : f32
    "tpu.trace_stop"() : () -> ()
    %26 = vector.broadcast %cst_20 : f32 to vector<1x8x8xf32>
    %27 = arith.select %22, %26, %25 : vector<1x8x8xi1>, vector<1x8x8xf32>
    %cst_21 = arith.constant dense<0xFF800000> : vector<1x8xf32>
    %28 = vector.multi_reduction <maximumf>, %27, %cst_21 [2] : vector<1x8x8xf32> to vector<1x8xf32>
    %29 = vector.shape_cast %28 : vector<1x8xf32> to vector<1x8x1xf32>
    %30 = vector.broadcast %29 : vector<1x8x1xf32> to vector<1x8x8xf32>
    %31 = arith.subf %27, %30 : vector<1x8x8xf32>
    %32 = math.exp %31 : vector<1x8x8xf32>
    %cst_22 = arith.constant dense<0.000000e+00> : vector<1x8xf32>
    %33 = vector.multi_reduction <add>, %32, %cst_22 [2] : vector<1x8x8xf32> to vector<1x8xf32>
    %34 = vector.shape_cast %33 : vector<1x8xf32> to vector<1x8x1xf32>
    %35 = tpu.reciprocal %34 {approx = true} : vector<1x8x1xf32> -> vector<1x8x1xf32>
    %36 = vector.broadcast %35 : vector<1x8x1xf32> to vector<1x8x8xf32>
    %37 = arith.mulf %32, %36 : vector<1x8x8xf32>
    %38 = arith.truncf %37 : vector<1x8x8xf32> to vector<1x8x8xbf16>
    %39 = vector.extract_strided_slice %18 {offsets = [0, 0, 0], sizes = [1, 8, 8], strides = [1, 1, 1]} : vector<1x8x32xbf16> to vector<1x8x8xbf16>
    "tpu.trace_start"() <{level = 10 : i32, message = "bqk,bkd->bqd"}> : () -> ()
    %cst_23 = arith.constant dense<0.000000e+00> : vector<1x8x8xf32>
    %40 = tpu.matmul %38, %39, %cst_23 {dimension_numbers = #tpu.dot_dimension_numbers<[2], [1], [1], [2], [0, 0, 0, 1, 1, 2], [0], [0]>} : vector<1x8x8xbf16>, vector<1x8x8xbf16>, vector<1x8x8xf32> -> vector<1x8x8xf32>
    "tpu.trace_stop"() : () -> ()
    %41 = vector.extract_strided_slice %14 {offsets = [0, 0, 8], sizes = [1, 8, 8], strides = [1, 1, 1]} : vector<1x8x32xbf16> to vector<1x8x8xbf16>
    %42 = vector.extract_strided_slice %16 {offsets = [0, 0, 8], sizes = [1, 8, 8], strides = [1, 1, 1]} : vector<1x8x32xbf16> to vector<1x8x8xbf16>
    "tpu.trace_start"() <{level = 10 : i32, message = "bqd,bkd->bqk"}> : () -> ()
    %cst_24 = arith.constant dense<0.000000e+00> : vector<1x8x8xf32>
    %43 = tpu.matmul %41, %42, %cst_24 {dimension_numbers = #tpu.dot_dimension_numbers<[2], [2], [1], [1], [0, 0, 0, 1, 1, 1], [0], [0]>} : vector<1x8x8xbf16>, vector<1x8x8xbf16>, vector<1x8x8xf32> -> vector<1x8x8xf32>
    %cst_25 = arith.constant -1.000000e+20 : f32
    "tpu.trace_stop"() : () -> ()
    %44 = vector.broadcast %cst_25 : f32 to vector<1x8x8xf32>
    %45 = arith.select %22, %44, %43 : vector<1x8x8xi1>, vector<1x8x8xf32>
    %cst_26 = arith.constant dense<0xFF800000> : vector<1x8xf32>
    %46 = vector.multi_reduction <maximumf>, %45, %cst_26 [2] : vector<1x8x8xf32> to vector<1x8xf32>
    %47 = vector.shape_cast %46 : vector<1x8xf32> to vector<1x8x1xf32>
    %48 = vector.broadcast %47 : vector<1x8x1xf32> to vector<1x8x8xf32>
    %49 = arith.subf %45, %48 : vector<1x8x8xf32>
    %50 = math.exp %49 : vector<1x8x8xf32>
    %cst_27 = arith.constant dense<0.000000e+00> : vector<1x8xf32>
    %51 = vector.multi_reduction <add>, %50, %cst_27 [2] : vector<1x8x8xf32> to vector<1x8xf32>
    %52 = vector.shape_cast %51 : vector<1x8xf32> to vector<1x8x1xf32>
    %53 = tpu.reciprocal %52 {approx = true} : vector<1x8x1xf32> -> vector<1x8x1xf32>
    %54 = vector.broadcast %53 : vector<1x8x1xf32> to vector<1x8x8xf32>
    %55 = arith.mulf %50, %54 : vector<1x8x8xf32>
    %56 = arith.truncf %55 : vector<1x8x8xf32> to vector<1x8x8xbf16>
    %57 = vector.extract_strided_slice %18 {offsets = [0, 0, 8], sizes = [1, 8, 8], strides = [1, 1, 1]} : vector<1x8x32xbf16> to vector<1x8x8xbf16>
    "tpu.trace_start"() <{level = 10 : i32, message = "bqk,bkd->bqd"}> : () -> ()
    %cst_28 = arith.constant dense<0.000000e+00> : vector<1x8x8xf32>
    %58 = tpu.matmul %56, %57, %cst_28 {dimension_numbers = #tpu.dot_dimension_numbers<[2], [1], [1], [2], [0, 0, 0, 1, 1, 2], [0], [0]>} : vector<1x8x8xbf16>, vector<1x8x8xbf16>, vector<1x8x8xf32> -> vector<1x8x8xf32>
    "tpu.trace_stop"() : () -> ()
    %59 = vector.extract_strided_slice %14 {offsets = [0, 0, 16], sizes = [1, 8, 8], strides = [1, 1, 1]} : vector<1x8x32xbf16> to vector<1x8x8xbf16>
    %60 = vector.extract_strided_slice %16 {offsets = [0, 0, 16], sizes = [1, 8, 8], strides = [1, 1, 1]} : vector<1x8x32xbf16> to vector<1x8x8xbf16>
    "tpu.trace_start"() <{level = 10 : i32, message = "bqd,bkd->bqk"}> : () -> ()
    %cst_29 = arith.constant dense<0.000000e+00> : vector<1x8x8xf32>
    %61 = tpu.matmul %59, %60, %cst_29 {dimension_numbers = #tpu.dot_dimension_numbers<[2], [2], [1], [1], [0, 0, 0, 1, 1, 1], [0], [0]>} : vector<1x8x8xbf16>, vector<1x8x8xbf16>, vector<1x8x8xf32> -> vector<1x8x8xf32>
    %cst_30 = arith.constant -1.000000e+20 : f32
    "tpu.trace_stop"() : () -> ()
    %62 = vector.broadcast %cst_30 : f32 to vector<1x8x8xf32>
    %63 = arith.select %22, %62, %61 : vector<1x8x8xi1>, vector<1x8x8xf32>
    %cst_31 = arith.constant dense<0xFF800000> : vector<1x8xf32>
    %64 = vector.multi_reduction <maximumf>, %63, %cst_31 [2] : vector<1x8x8xf32> to vector<1x8xf32>
    %65 = vector.shape_cast %64 : vector<1x8xf32> to vector<1x8x1xf32>
    %66 = vector.broadcast %65 : vector<1x8x1xf32> to vector<1x8x8xf32>
    %67 = arith.subf %63, %66 : vector<1x8x8xf32>
    %68 = math.exp %67 : vector<1x8x8xf32>
    %cst_32 = arith.constant dense<0.000000e+00> : vector<1x8xf32>
    %69 = vector.multi_reduction <add>, %68, %cst_32 [2] : vector<1x8x8xf32> to vector<1x8xf32>
    %70 = vector.shape_cast %69 : vector<1x8xf32> to vector<1x8x1xf32>
    %71 = tpu.reciprocal %70 {approx = true} : vector<1x8x1xf32> -> vector<1x8x1xf32>
    %72 = vector.broadcast %71 : vector<1x8x1xf32> to vector<1x8x8xf32>
    %73 = arith.mulf %68, %72 : vector<1x8x8xf32>
    %74 = arith.truncf %73 : vector<1x8x8xf32> to vector<1x8x8xbf16>
    %75 = vector.extract_strided_slice %18 {offsets = [0, 0, 16], sizes = [1, 8, 8], strides = [1, 1, 1]} : vector<1x8x32xbf16> to vector<1x8x8xbf16>
    "tpu.trace_start"() <{level = 10 : i32, message = "bqk,bkd->bqd"}> : () -> ()
    %cst_33 = arith.constant dense<0.000000e+00> : vector<1x8x8xf32>
    %76 = tpu.matmul %74, %75, %cst_33 {dimension_numbers = #tpu.dot_dimension_numbers<[2], [1], [1], [2], [0, 0, 0, 1, 1, 2], [0], [0]>} : vector<1x8x8xbf16>, vector<1x8x8xbf16>, vector<1x8x8xf32> -> vector<1x8x8xf32>
    "tpu.trace_stop"() : () -> ()
    %77 = vector.extract_strided_slice %14 {offsets = [0, 0, 24], sizes = [1, 8, 8], strides = [1, 1, 1]} : vector<1x8x32xbf16> to vector<1x8x8xbf16>
    %78 = vector.extract_strided_slice %16 {offsets = [0, 0, 24], sizes = [1, 8, 8], strides = [1, 1, 1]} : vector<1x8x32xbf16> to vector<1x8x8xbf16>
    "tpu.trace_start"() <{level = 10 : i32, message = "bqd,bkd->bqk"}> : () -> ()
    %cst_34 = arith.constant dense<0.000000e+00> : vector<1x8x8xf32>
    %79 = tpu.matmul %77, %78, %cst_34 {dimension_numbers = #tpu.dot_dimension_numbers<[2], [2], [1], [1], [0, 0, 0, 1, 1, 1], [0], [0]>} : vector<1x8x8xbf16>, vector<1x8x8xbf16>, vector<1x8x8xf32> -> vector<1x8x8xf32>
    %cst_35 = arith.constant -1.000000e+20 : f32
    "tpu.trace_stop"() : () -> ()
    %80 = vector.broadcast %cst_35 : f32 to vector<1x8x8xf32>
    %81 = arith.select %22, %80, %79 : vector<1x8x8xi1>, vector<1x8x8xf32>
    %cst_36 = arith.constant dense<0xFF800000> : vector<1x8xf32>
    %82 = vector.multi_reduction <maximumf>, %81, %cst_36 [2] : vector<1x8x8xf32> to vector<1x8xf32>
    %83 = vector.shape_cast %82 : vector<1x8xf32> to vector<1x8x1xf32>
    %84 = vector.broadcast %83 : vector<1x8x1xf32> to vector<1x8x8xf32>
    %85 = arith.subf %81, %84 : vector<1x8x8xf32>
    %86 = math.exp %85 : vector<1x8x8xf32>
    %cst_37 = arith.constant dense<0.000000e+00> : vector<1x8xf32>
    %87 = vector.multi_reduction <add>, %86, %cst_37 [2] : vector<1x8x8xf32> to vector<1x8xf32>
    %88 = vector.shape_cast %87 : vector<1x8xf32> to vector<1x8x1xf32>
    %89 = tpu.reciprocal %88 {approx = true} : vector<1x8x1xf32> -> vector<1x8x1xf32>
    %90 = vector.broadcast %89 : vector<1x8x1xf32> to vector<1x8x8xf32>
    %91 = arith.mulf %86, %90 : vector<1x8x8xf32>
    %92 = arith.truncf %91 : vector<1x8x8xf32> to vector<1x8x8xbf16>
    %93 = vector.extract_strided_slice %18 {offsets = [0, 0, 24], sizes = [1, 8, 8], strides = [1, 1, 1]} : vector<1x8x32xbf16> to vector<1x8x8xbf16>
    "tpu.trace_start"() <{level = 10 : i32, message = "bqk,bkd->bqd"}> : () -> ()
    %cst_38 = arith.constant dense<0.000000e+00> : vector<1x8x8xf32>
    %94 = tpu.matmul %92, %93, %cst_38 {dimension_numbers = #tpu.dot_dimension_numbers<[2], [1], [1], [2], [0, 0, 0, 1, 1, 2], [0], [0]>} : vector<1x8x8xbf16>, vector<1x8x8xbf16>, vector<1x8x8xf32> -> vector<1x8x8xf32>
    "tpu.trace_stop"() : () -> ()
    %95 = tpu.concatenate %40, %58, %76, %94 in 2 : vector<1x8x8xf32>, vector<1x8x8xf32>, vector<1x8x8xf32>, vector<1x8x8xf32> -> vector<1x8x32xf32>
    %96 = vector.shape_cast %95 : vector<1x8x32xf32> to vector<8x32xf32>
    %97 = arith.truncf %96 : vector<8x32xf32> to vector<8x32xbf16>
    %c0_39 = arith.constant 0 : index
    %c0_40 = arith.constant 0 : index
    %98 = vector.load %arg8[%c0_39, %c0_40] : memref<32x32xbf16, #tpu.memory_space<vmem>>, vector<32x32xbf16>
    %cst_41 = arith.constant dense<0.000000e+00> : vector<8x32xf32>
    %99 = tpu.matmul %97, %98, %cst_41 {dimension_numbers = #tpu.dot_dimension_numbers<[1], [0], [0], [1], [0, 0, 1, 1], [], []>} : vector<8x32xbf16>, vector<32x32xbf16>, vector<8x32xf32> -> vector<8x32xf32>
    %c0_42 = arith.constant 0 : index
    %c0_43 = arith.constant 0 : index
    %100 = vector.load %arg9[%c0_42, %c0_43] : memref<1x32xf32, #tpu.memory_space<vmem>>, vector<1x32xf32>
    %101 = vector.broadcast %100 : vector<1x32xf32> to vector<8x32xf32>
    %102 = arith.addf %99, %101 : vector<8x32xf32>
    %c0_44 = arith.constant 0 : index
    %c0_45 = arith.constant 0 : index
    %c0_46 = arith.constant 0 : index
    %103 = vector.load %arg1[%c0_44, %c0_45, %c0_46] : memref<1x8x32xf32, #tpu.memory_space<vmem>>, vector<1x8x32xf32>
    %104 = vector.shape_cast %103 : vector<1x8x32xf32> to vector<8x32xf32>
    %105 = arith.addf %102, %104 : vector<8x32xf32>
    %c0_47 = arith.constant 0 : index
    %c0_48 = arith.constant 0 : index
    %106 = vector.load %arg10[%c0_47, %c0_48] : memref<1x32xf32, #tpu.memory_space<vmem>>, vector<1x32xf32>
    %c0_49 = arith.constant 0 : index
    %c0_50 = arith.constant 0 : index
    %107 = vector.load %arg11[%c0_49, %c0_50] : memref<1x32xf32, #tpu.memory_space<vmem>>, vector<1x32xf32>
    %cst_51 = arith.constant dense<0.000000e+00> : vector<8xf32>
    %108 = vector.multi_reduction <add>, %105, %cst_51 [1] : vector<8x32xf32> to vector<8xf32>
    %109 = vector.shape_cast %108 : vector<8xf32> to vector<8x1xf32>
    %cst_52 = arith.constant 3.200000e+01 : f32
    %110 = vector.broadcast %cst_52 : f32 to vector<8x1xf32>
    %111 = arith.divf %109, %110 : vector<8x1xf32>
    %112 = vector.broadcast %111 : vector<8x1xf32> to vector<8x32xf32>
    %113 = arith.subf %105, %112 : vector<8x32xf32>
    %114 = arith.mulf %113, %113 : vector<8x32xf32>
    %cst_53 = arith.constant dense<0.000000e+00> : vector<8xf32>
    %115 = vector.multi_reduction <add>, %114, %cst_53 [1] : vector<8x32xf32> to vector<8xf32>
    %116 = vector.shape_cast %115 : vector<8xf32> to vector<8x1xf32>
    %cst_54 = arith.constant 3.200000e+01 : f32
    %117 = vector.broadcast %cst_54 : f32 to vector<8x1xf32>
    %118 = arith.divf %116, %117 : vector<8x1xf32>
    %119 = vector.broadcast %111 : vector<8x1xf32> to vector<8x32xf32>
    %120 = arith.subf %105, %119 : vector<8x32xf32>
    %cst_55 = arith.constant 9.99999974E-6 : f32
    %121 = vector.broadcast %cst_55 : f32 to vector<8x1xf32>
    %122 = arith.addf %118, %121 : vector<8x1xf32>
    %123 = math.rsqrt %122 : vector<8x1xf32>
    %124 = vector.broadcast %123 : vector<8x1xf32> to vector<8x32xf32>
    %125 = arith.mulf %120, %124 : vector<8x32xf32>
    %126 = vector.broadcast %106 : vector<1x32xf32> to vector<8x32xf32>
    %127 = arith.mulf %125, %126 : vector<8x32xf32>
    %128 = vector.broadcast %107 : vector<1x32xf32> to vector<8x32xf32>
    %129 = arith.addf %127, %128 : vector<8x32xf32>
    %130 = arith.truncf %129 : vector<8x32xf32> to vector<8x32xbf16>
    %c0_56 = arith.constant 0 : index
    %c0_57 = arith.constant 0 : index
    %131 = vector.load %arg14[%c0_56, %c0_57] : memref<32x128xbf16, #tpu.memory_space<vmem>>, vector<32x128xbf16>
    %cst_58 = arith.constant dense<0.000000e+00> : vector<8x128xf32>
    %132 = tpu.matmul %130, %131, %cst_58 {dimension_numbers = #tpu.dot_dimension_numbers<[1], [0], [0], [1], [0, 0, 1, 1], [], []>} : vector<8x32xbf16>, vector<32x128xbf16>, vector<8x128xf32> -> vector<8x128xf32>
    %c0_59 = arith.constant 0 : index
    %c0_60 = arith.constant 0 : index
    %133 = vector.load %arg15[%c0_59, %c0_60] : memref<1x128xf32, #tpu.memory_space<vmem>>, vector<1x128xf32>
    %134 = vector.broadcast %133 : vector<1x128xf32> to vector<8x128xf32>
    %135 = arith.addf %132, %134 : vector<8x128xf32>
    %cst_61 = arith.constant 0.000000e+00 : f32
    %136 = vector.broadcast %cst_61 : f32 to vector<8x128xf32>
    %137 = arith.maximumf %135, %136 : vector<8x128xf32>
    %138 = arith.truncf %137 : vector<8x128xf32> to vector<8x128xbf16>
    %c0_62 = arith.constant 0 : index
    %c0_63 = arith.constant 0 : index
    %139 = vector.load %arg16[%c0_62, %c0_63] : memref<128x32xbf16, #tpu.memory_space<vmem>>, vector<128x32xbf16>
    %cst_64 = arith.constant dense<0.000000e+00> : vector<8x32xf32>
    %140 = tpu.matmul %138, %139, %cst_64 {dimension_numbers = #tpu.dot_dimension_numbers<[1], [0], [0], [1], [0, 0, 1, 1], [], []>} : vector<8x128xbf16>, vector<128x32xbf16>, vector<8x32xf32> -> vector<8x32xf32>
    %c0_65 = arith.constant 0 : index
    %c0_66 = arith.constant 0 : index
    %141 = vector.load %arg17[%c0_65, %c0_66] : memref<1x32xf32, #tpu.memory_space<vmem>>, vector<1x32xf32>
    %142 = vector.broadcast %141 : vector<1x32xf32> to vector<8x32xf32>
    %143 = arith.addf %140, %142 : vector<8x32xf32>
    %144 = arith.addf %143, %129 : vector<8x32xf32>
    %c0_67 = arith.constant 0 : index
    %c0_68 = arith.constant 0 : index
    %145 = vector.load %arg12[%c0_67, %c0_68] : memref<1x32xf32, #tpu.memory_space<vmem>>, vector<1x32xf32>
    %c0_69 = arith.constant 0 : index
    %c0_70 = arith.constant 0 : index
    %146 = vector.load %arg13[%c0_69, %c0_70] : memref<1x32xf32, #tpu.memory_space<vmem>>, vector<1x32xf32>
    %cst_71 = arith.constant dense<0.000000e+00> : vector<8xf32>
    %147 = vector.multi_reduction <add>, %144, %cst_71 [1] : vector<8x32xf32> to vector<8xf32>
    %148 = vector.shape_cast %147 : vector<8xf32> to vector<8x1xf32>
    %cst_72 = arith.constant 3.200000e+01 : f32
    %149 = vector.broadcast %cst_72 : f32 to vector<8x1xf32>
    %150 = arith.divf %148, %149 : vector<8x1xf32>
    %151 = vector.broadcast %150 : vector<8x1xf32> to vector<8x32xf32>
    %152 = arith.subf %144, %151 : vector<8x32xf32>
    %153 = arith.mulf %152, %152 : vector<8x32xf32>
    %cst_73 = arith.constant dense<0.000000e+00> : vector<8xf32>
    %154 = vector.multi_reduction <add>, %153, %cst_73 [1] : vector<8x32xf32> to vector<8xf32>
    %155 = vector.shape_cast %154 : vector<8xf32> to vector<8x1xf32>
    %cst_74 = arith.constant 3.200000e+01 : f32
    %156 = vector.broadcast %cst_74 : f32 to vector<8x1xf32>
    %157 = arith.divf %155, %156 : vector<8x1xf32>
    %158 = vector.broadcast %150 : vector<8x1xf32> to vector<8x32xf32>
    %159 = arith.subf %144, %158 : vector<8x32xf32>
    %cst_75 = arith.constant 9.99999974E-6 : f32
    %160 = vector.broadcast %cst_75 : f32 to vector<8x1xf32>
    %161 = arith.addf %157, %160 : vector<8x1xf32>
    %162 = math.rsqrt %161 : vector<8x1xf32>
    %163 = vector.broadcast %162 : vector<8x1xf32> to vector<8x32xf32>
    %164 = arith.mulf %159, %163 : vector<8x32xf32>
    %165 = vector.broadcast %145 : vector<1x32xf32> to vector<8x32xf32>
    %166 = arith.mulf %164, %165 : vector<8x32xf32>
    %167 = vector.broadcast %146 : vector<1x32xf32> to vector<8x32xf32>
    %168 = arith.addf %166, %167 : vector<8x32xf32>
    %169 = vector.shape_cast %168 : vector<8x32xf32> to vector<1x8x32xf32>
    %c0_76 = arith.constant 0 : index
    %c0_77 = arith.constant 0 : index
    %c0_78 = arith.constant 0 : index
    %170 = vector.load %arg18[%c0_76, %c0_77, %c0_78] : memref<1x8x32xf32, #tpu.memory_space<vmem>>, vector<1x8x32xf32>
    tpu.vector_store %arg18[%c0_76, %c0_77, %c0_78], %169 {strides = array<i32>} : memref<1x8x32xf32, #tpu.memory_space<vmem>>, vector<1x8x32xf32>,
    return
  }
  func.func @transform_0(%arg0: i32) -> (i32, i32, i32) {
    %c0_i32 = arith.constant 0 : i32
    %c0_i32_0 = arith.constant 0 : i32
    %c0_i32_1 = arith.constant 0 : i32
    return %arg0, %c0_i32, %c0_i32_0 : i32, i32, i32
  }
  func.func @transform_1(%arg0: i32) -> (i32, i32, i32) {
    %c0_i32 = arith.constant 0 : i32
    %c0_i32_0 = arith.constant 0 : i32
    %c0_i32_1 = arith.constant 0 : i32
    return %arg0, %c0_i32, %c0_i32_0 : i32, i32, i32
  }
  func.func @transform_2(%arg0: i32) -> (i32, i32, i32) {
    %c0_i32 = arith.constant 0 : i32
    %c0_i32_0 = arith.constant 0 : i32
    %c0_i32_1 = arith.constant 0 : i32
    return %arg0, %c0_i32, %c0_i32_0 : i32, i32, i32
  }
  func.func @transform_3(%arg0: i32) -> (i32, i32, i32) {
    %c0_i32 = arith.constant 0 : i32
    %c0_i32_0 = arith.constant 0 : i32
    %c0_i32_1 = arith.constant 0 : i32
    return %arg0, %c0_i32, %c0_i32_0 : i32, i32, i32
  }
  func.func @transform_4(%arg0: i32) -> (i32, i32) {
    %c0_i32 = arith.constant 0 : i32
    %c0_i32_0 = arith.constant 0 : i32
    %c0_i32_1 = arith.constant 0 : i32
    return %c0_i32, %c0_i32_0 : i32, i32
  }
  func.func @transform_5(%arg0: i32) -> (i32, i32) {
    %c0_i32 = arith.constant 0 : i32
    %c0_i32_0 = arith.constant 0 : i32
    %c0_i32_1 = arith.constant 0 : i32
    return %c0_i32, %c0_i32_0 : i32, i32
  }
  func.func @transform_6(%arg0: i32) -> (i32, i32) {
    %c0_i32 = arith.constant 0 : i32
    %c0_i32_0 = arith.constant 0 : i32
    %c0_i32_1 = arith.constant 0 : i32
    return %c0_i32, %c0_i32_0 : i32, i32
  }
  func.func @transform_7(%arg0: i32) -> (i32, i32) {
    %c0_i32 = arith.constant 0 : i32
    %c0_i32_0 = arith.constant 0 : i32
    %c0_i32_1 = arith.constant 0 : i32
    return %c0_i32, %c0_i32_0 : i32, i32
  }
  func.func @transform_8(%arg0: i32) -> (i32, i32) {
    %c0_i32 = arith.constant 0 : i32
    %c0_i32_0 = arith.constant 0 : i32
    %c0_i32_1 = arith.constant 0 : i32
    return %c0_i32, %c0_i32_0 : i32, i32
  }
  func.func @transform_9(%arg0: i32) -> (i32, i32) {
    %c0_i32 = arith.constant 0 : i32
    %c0_i32_0 = arith.constant 0 : i32
    %c0_i32_1 = arith.constant 0 : i32
    return %c0_i32, %c0_i32_0 : i32, i32
  }
  func.func @transform_10(%arg0: i32) -> (i32, i32) {
    %c0_i32 = arith.constant 0 : i32
    %c0_i32_0 = arith.constant 0 : i32
    %c0_i32_1 = arith.constant 0 : i32
    return %c0_i32, %c0_i32_0 : i32, i32
  }
  func.func @transform_11(%arg0: i32) -> (i32, i32) {
    %c0_i32 = arith.constant 0 : i32
    %c0_i32_0 = arith.constant 0 : i32
    %c0_i32_1 = arith.constant 0 : i32
    return %c0_i32, %c0_i32_0 : i32, i32
  }
  func.func @transform_12(%arg0: i32) -> (i32, i32) {
    %c0_i32 = arith.constant 0 : i32
    %c0_i32_0 = arith.constant 0 : i32
    %c0_i32_1 = arith.constant 0 : i32
    return %c0_i32, %c0_i32_0 : i32, i32
  }
  func.func @transform_13(%arg0: i32) -> (i32, i32) {
    %c0_i32 = arith.constant 0 : i32
    %c0_i32_0 = arith.constant 0 : i32
    %c0_i32_1 = arith.constant 0 : i32
    return %c0_i32, %c0_i32_0 : i32, i32
  }
  func.func @transform_14(%arg0: i32) -> (i32, i32) {
    %c0_i32 = arith.constant 0 : i32
    %c0_i32_0 = arith.constant 0 : i32
    %c0_i32_1 = arith.constant 0 : i32
    return %c0_i32, %c0_i32_0 : i32, i32
  }
  func.func @transform_15(%arg0: i32) -> (i32, i32) {
    %c0_i32 = arith.constant 0 : i32
    %c0_i32_0 = arith.constant 0 : i32
    %c0_i32_1 = arith.constant 0 : i32
    return %c0_i32, %c0_i32_0 : i32, i32
  }
  func.func @transform_16(%arg0: i32) -> (i32, i32) {
    %c0_i32 = arith.constant 0 : i32
    %c0_i32_0 = arith.constant 0 : i32
    %c0_i32_1 = arith.constant 0 : i32
    return %c0_i32, %c0_i32_0 : i32, i32
  }
  func.func @transform_17(%arg0: i32) -> (i32, i32, i32) {
    %c0_i32 = arith.constant 0 : i32
    %c0_i32_0 = arith.constant 0 : i32
    %c0_i32_1 = arith.constant 0 : i32
    return %arg0, %c0_i32, %c0_i32_0 : i32, i32, i32
  }
}

</mosaic_0001>

<bundles_post_ra>
// kernel: tpu_custom_call.1
= control target key start
LH: loop header
LB: loop body
LE: loop exit
PB: predicated region body
PF: predicated region fallthrough
CT: control target
= control target key end

     0   :  { %s2761_s0 = inlined_call_operand.vmem [shape: f32[2,8,32], index: 0, kind: input, shape index: {}]   ;;  %s2762_s1 = inlined_call_operand.hbm [shape: bf16[2,8,32], index: 1, kind: input, shape index: {}]   ;;  %s2763_s2 = inlined_call_operand.hbm [shape: bf16[2,8,32], index: 2, kind: input, shape index: {}]   ;;  %s2764_s3 = inlined_call_operand.hbm [shape: s8[2,8,8], index: 3, kind: input, shape index: {}]   ;;  %s2765_s4 = inlined_call_operand.vmem [shape: bf16[32,32], index: 4, kind: input, shape index: {}]   ;;  %s2766_s5 = inlined_call_operand.vmem [shape: bf16[32,32], index: 5, kind: input, shape index: {}]   ;;  %s2767_s6 = inlined_call_operand.vmem [shape: bf16[32,32], index: 6, kind: input, shape index: {}]   ;;  %s2768_s7 = inlined_call_operand.vmem [shape: bf16[32,32], index: 7, kind: input, shape index: {}]   ;;  %s2769_s8 = inlined_call_operand.vmem [shape: f32[1,32], index: 8, kind: input, shape index: {}]   ;;  %s2770_s9 = inlined_call_operand.vmem [shape: f32[1,32], index: 9, kind: input, shape index: {}]   ;;  %s2771_s10 = inlined_call_operand.vmem [shape: f32[1,32], index: 10, kind: input, shape index: {}]   ;;  %s2772_s11 = inlined_call_operand.vmem [shape: f32[1,32], index: 11, kind: input, shape index: {}]   ;;  %s2773_s12 = inlined_call_operand.vmem [shape: f32[1,32], index: 12, kind: input, shape index: {}]   ;;  %s2774_s13 = inlined_call_operand.vmem [shape: bf16[32,128], index: 13, kind: input, shape index: {}]   ;;  %s2775_s14 = inlined_call_operand.vmem [shape: f32[1,128], index: 14, kind: input, shape index: {}]   ;;  %s2776_s15 = inlined_call_operand.vmem [shape: bf16[128,32], index: 15, kind: input, shape index: {}]   ;;  %s2777_s16 = inlined_call_operand.vmem [shape: f32[1,32], index: 16, kind: input, shape index: {}]   ;;  %s2778_s17 = inlined_call_operand.hbm [shape: f32[2,8,32], index: 17, kind: output, shape index: {}]  }
   0x1   :  { %2793 = sst [smem:[#allocation18_spill]] %s2761_s0 }
   0x2   :  { %2794 = sst [smem:[#allocation19_spill]] %s2762_s1 }
   0x3   :  { %2795 = sst [smem:[#allocation20_spill]] %s2763_s2 }
   0x4   :  { %2796 = sst [smem:[#allocation21_spill]] %s2771_s10 }
   0x5   :  { %2797 = sst [smem:[#allocation22_spill]] %s2772_s11 }
   0x6   :  { %2798 = sst [smem:[#allocation23_spill]] %s2773_s12 }
   0x7   :  { %2799 = sst [smem:[#allocation24_spill]] %s2775_s14 }
   0x8   :  { %2800 = sst [smem:[#allocation25_spill]] %s2777_s16 }
   0x9   :  { %2801 = sst [smem:[#allocation26_spill]] %s2778_s17 }
   0xa   :  { %22 = vsyncpa [#allocation3], 0 }
   0xb   :  { %24 = vsyncpa [#allocation3 + $0x1], 0 }
   0xc   :  { %25 = vsyncpa [#allocation6], 0 }
   0xd   :  { %27 = vsyncpa [#allocation6 + $0x1], 0 }
   0xe   :  { %28 = vsyncpa [#allocation4], 0 }
   0xf   :  { %30 = vsyncpa [#allocation4 + $0x1], 0  ;;  %s2321_s24 = smov 0   ;;  %s2323_s25 = smov 0  }
  0x10   :  { %s2325_s26 = smov 0   ;;  %s2327_s27 = smov 0  }
  0x11 LB: > { %2802 = sst [smem:[#allocation12_spill]] %s2205_s24  ;;  %s2342_s28 = sadd.s32 4294967295, %s2217_s27   ;;  %s2217_s27 = sphi %s2327_s27, %s2838_s27   ;;  %s2213_s26 = sphi %s2325_s26, %s2840_s26   ;;  %s2209_s25 = sphi %s2323_s25, %s2842_s25   ;;  %s2205_s24 = sphi %s2321_s24, %s2841_s24  }
  0x12   : > { %2803 = sst [smem:[#allocation13_spill]] %s2213_s26  ;;  %s1750_s29 = sadd.s32 4294967294, %s2217_s27  }
  0x13   : > { %s2346_s0 = sadd.s32 1, %s2217_s27   ;;  %s69_s30 = sadd.s32 1, %s2213_s26 }
  0x14   : > { %2804 = sst [smem:[#allocation14_spill]] %s2346_s0  ;;  %s66_s18 = ssub.s32 %s2217_s27, %s2346_s0 }
  0x15   : > { %p76_p0 = scmp.ne.s32.totalorder %s2213_s26, %s2209_s25  ;;  %p67_p1 = scmp.eq.s32.totalorder %s66_s18, 0 }
  0x16   : > { %p77_p2 = scmp.eq.s32.totalorder %s2217_s27, 0  ;;  %p82_p3 = scmp.ne.s32.totalorder %s2209_s25, %s2205_s24 }
  0x17   : > { %p83_p4 = scmp.eq.s32.totalorder %s2342_s28, 0  ;;  %p431_p7 = scmp.eq.s32.totalorder %s2342_s28, 1 }
  0x18   : > { %s2358_s19 = scalar_select %p67_p1, %s2213_s26, %s69_s30  }
  0x19   : > { %p78_p5 = por %p77_p2, %p76_p0  ;;  %p2360_p6 = por %p83_p4, %p82_p3 }
  0x1a   : > { %2805 = sst [smem:[#allocation15_spill]] %s2358_s19  ;;  %p437_p8 = scmp.eq.s32.totalorder %s1750_s29, 1 }
  0x1b   : > { %s2806_s1 = scalar_select %p2360_p6, 1, 0 }
  0x1c   : > { %p1977_p10 = scmp.lt.s32.totalorder %s2217_s27, 2  ;;  %p2367_p11 = por %p431_p7, %p76_p0 }
  0x1d   : > { %p2371_p12 = por %p437_p8, %p82_p3  ;;  %s2376_s22 = sand.u32 1, %s2213_s26  }
  0x1e   : > { %s2807_s20 = scalar_select %p2367_p11, 1, 0 }
  0x1f   : > { %s2809_s21 = scalar_select %p2371_p12, 1, 0 }
  0x20   : > { %2808 = sst [smem:[#allocation16_spill]] %s2807_s20  ;;  %s2787_s23 = sshll.u32 %s2217_s27, 6 }
  0x21   : > { %2810 = sst [smem:[#allocation17_spill]] %s2809_s21  ;;  %s2786_s30 = sshll.u32 %s2376_s22, 2 }
  0x22   : > { %p2380_p13 = pnand %p1977_p10, %p78_p5  ;;  %s521_s29 = sand.u32 1, %s2217_s27  }
  0x23   : > { %s2812_s2 = sld [smem:[#allocation20_spill]]  ;;  %s525_s26 = scalar_lea.vmem [#allocation5], %s2786_s30 }
  0x24   : > { %s2811_s18 = scalar_select %p2380_p13, 1, 0 }
  0x25   : > { %s532_s21 = sshll.u32 %s525_s26, 4  ;;  %s2397_s17 = scalar_lea.sflag [#allocation6], %s521_s29  ;;  %s2394_s21 = int_to_ptr.vmem [resolvable:$true] %s532_s21 }
  0x26   : > { %p2403_p2 = pneg %p2380_p13 }
  0x29   : > { %s2390_s24 = scalar_lea.hbm %s2812_s2, %s2787_s23  ;;  %s2062_s26 = scalar_lea.hbm %s2812_s2, 128 }
  0x2a   : > { %s2057_s12 = scalar_lea.hbm %s2390_s24, 64  ;;  %p2063_p5 = scmp.lt.u32.totalorder %s2390_s24, %s2812_s2 }
  0x2b   : > { %p2058_p1 = scmp.ne.s32.totalorder %s2390_s24, %s2057_s12  ;;  %p2064_p7 = scmp.lt.u32.totalorder %s2062_s26, %s2057_s12 }
  0x2c   : > { %p2066_p10 = scmp.lt.u32.totalorder %s2057_s12, %s2390_s24 }
  0x2d   : > { %p2060_p3 = pnand %p2403_p2, %p2058_p1  ;;  %p2065_p8 = por %p2064_p7, %p2063_p5 }
  0x2f   : > { %p2061_p4 = pneg %p2060_p3  ;;  %p2067_p9 = por %p2066_p10, %p2065_p8 }
  0x31   : > { %p2068_p0 = pnand %p2067_p9, %p2061_p4 }
  0x33   : > { %2071 = shalt.err (!%p2068_p0)
}
  0x34   : > { %s2072_s29 = scalar_lea.vmem %s2394_s21, 64  ;;  %s2219_s0 = smov [#allocation5]  }
  0x35   : > { %p2073_p1 = scmp.ne.s32.totalorder %s2394_s21, %s2072_s29  ;;  %s2077_s19 = sshll.u32 %s2219_s0, 4  ;;  %s2078_s19 = int_to_ptr.vmem [resolvable:$false] %s2077_s19 }
  0x36   : > { %s2079_s23 = scalar_lea.vmem %s2078_s19, 128  ;;  %p2080_p11 = scmp.lt.s32.totalorder %s2394_s21, %s2078_s19 }
  0x37   : > { %p2075_p3 = pnand %p2073_p1, %p2403_p2  ;;  %p2081_p6 = scmp.lt.s32.totalorder %s2079_s23, %s2072_s29 }
  0x39   : > { %p2076_p12 = pneg %p2075_p3  ;;  %p2082_p5 = por %p2081_p6, %p2080_p11 }
  0x3b   : > { %p2083_p7 = pnand %p2082_p5, %p2076_p12 }
  0x3d   : > { %2086 = shalt.err (!%p2083_p7)
}
  0x3e   : > { %1969 = dma.hbm_to_vmem [thread:$0]  (!%p2380_p13), %s2390_s24, 64, %s2394_s21, %s2397_s17  }
  0x3f   : > { %p555_p9 = scmp.lt.s32.totalorder %s2217_s27, 3  ;;  %s2814_s12 = sshll.u32 %s2217_s27, 6 }
  0x40   : > { %s2815_s29 = sld [smem:[#allocation19_spill]]  ;;  %p2816_p6 = scmp.ge.s32.totalorder %s2217_s27, 1 }
  0x41   : > { %s2818_s23 = sshll.u32 %s2376_s22, 2  ;;  %s1757_s24 = sshll.u32 %s2376_s22, 1 }
  0x42   : > { %p2437_p11 = pnand %p2816_p6, %p555_p9  ;;  %s507_s2 = scalar_lea.vmem [#allocation2], %s2818_s23 }
  0x43   : > { %s514_s20 = sshll.u32 %s507_s2, 4  ;;  %s504_s21 = scalar_lea.sflag [#allocation3], %s2376_s22  ;;  %s2443_s20 = int_to_ptr.vmem [resolvable:$true] %s514_s20 }
  0x44   : > { %s2817_s19 = scalar_select %p2437_p11, 1, 0 }
  0x46   : > { %s2433_s0 = scalar_lea.hbm %s2815_s29, %s2814_s12  ;;  %s2092_s26 = scalar_lea.hbm %s2815_s29, 128 }
  0x47   : > { %s2087_s16 = scalar_lea.hbm %s2433_s0, 64  ;;  %p2093_p8 = scmp.lt.u32.totalorder %s2433_s0, %s2815_s29 }
  0x48   : > { %p2088_p12 = scmp.ne.s32.totalorder %s2433_s0, %s2087_s16  ;;  %p2094_p10 = scmp.lt.u32.totalorder %s2092_s26, %s2087_s16 }
  0x49   : > { %p2096_p3 = scmp.lt.u32.totalorder %s2087_s16, %s2433_s0 }
  0x4a   : > { %p2090_p0 = pnand %p2088_p12, %p2403_p2  ;;  %p2095_p1 = por %p2094_p10, %p2093_p8 }
  0x4c   : > { %p2091_p4 = pneg %p2090_p0  ;;  %p2097_p5 = por %p2096_p3, %p2095_p1 }
  0x4e   : > { %p2098_p7 = pnand %p2097_p5, %p2091_p4 }
  0x50   : > { %2101 = shalt.err (!%p2098_p7)
}
  0x51   : > { %s2102_s2 = scalar_lea.vmem %s2443_s20, 64  ;;  %s2220_s23 = smov [#allocation2]  }
  0x52   : > { %p2103_p9 = scmp.ne.s32.totalorder %s2443_s20, %s2102_s2  ;;  %s2107_s12 = sshll.u32 %s2220_s23, 4  ;;  %s2108_s12 = int_to_ptr.vmem [resolvable:$false] %s2107_s12 }
  0x53   : > { %s2109_s10 = scalar_lea.vmem %s2108_s12, 128  ;;  %p2110_p0 = scmp.lt.s32.totalorder %s2443_s20, %s2108_s12 }
  0x54   : > { %p2105_p6 = pnand %p2103_p9, %p2403_p2  ;;  %p2111_p11 = scmp.lt.s32.totalorder %s2109_s10, %s2102_s2 }
  0x56   : > { %p2106_p12 = pneg %p2105_p6  ;;  %p2112_p8 = por %p2111_p11, %p2110_p0 }
  0x58   : > { %p2113_p10 = pnand %p2112_p8, %p2106_p12 }
  0x5a   : > { %2116 = shalt.err (!%p2113_p10)
}
  0x5b   : > { %1966 = dma.hbm_to_vmem [thread:$0]  (!%p2380_p13), %s2433_s0, 64, %s2443_s20, %s504_s21  }
  0x5c   : > { %s1758_s14 = sshll.u32 %s2217_s27, 5  ;;  %s543_s2 = scalar_lea.vmem [#allocation7], %s1757_s24 }
  0x5d   : > { %s2472_s26 = scalar_lea.hbm %s2764_s3, %s1758_s14  ;;  %s550_s23 = sshll.u32 %s543_s2, 4  ;;  %s551_s23 = int_to_ptr.vmem [resolvable:$true] %s550_s23 }
  0x5e   : > { %s2117_s12 = scalar_lea.hbm %s2472_s26, 32  ;;  %s2122_s21 = scalar_lea.hbm %s2764_s3, 64 }
  0x5f   : > { %p2118_p11 = scmp.ne.s32.totalorder %s2472_s26, %s2117_s12  ;;  %p2123_p3 = scmp.lt.u32.totalorder %s2472_s26, %s2764_s3 }
  0x60   : > { %p2124_p5 = scmp.lt.u32.totalorder %s2122_s21, %s2117_s12  ;;  %p2126_p9 = scmp.lt.u32.totalorder %s2117_s12, %s2472_s26 }
  0x61   : > { %p2120_p4 = pnand %p2118_p11, %p2403_p2 }
  0x62   : > { %p2125_p7 = por %p2124_p5, %p2123_p3 }
  0x63   : > { %p2121_p1 = pneg %p2120_p4 }
  0x64   : > { %p2127_p6 = por %p2126_p9, %p2125_p7 }
  0x66   : > { %p2128_p12 = pnand %p2127_p6, %p2121_p1 }
  0x68   : > { %2131 = shalt.err (!%p2128_p12)
}
  0x69   : > { %s2132_s22 = scalar_lea.vmem %s551_s23, 32  ;;  %s2221_s24 = smov [#allocation7]  }
  0x6a   : > { %p2133_p0 = scmp.ne.s32.totalorder %s551_s23, %s2132_s22  ;;  %s2137_s16 = sshll.u32 %s2221_s24, 4  ;;  %s2138_s16 = int_to_ptr.vmem [resolvable:$false] %s2137_s16 }
  0x6b   : > { %s2139_s30 = scalar_lea.vmem %s2138_s16, 64  ;;  %p2140_p11 = scmp.lt.s32.totalorder %s551_s23, %s2138_s16 }
  0x6c   : > { %p2135_p8 = pnand %p2133_p0, %p2403_p2  ;;  %p2141_p4 = scmp.lt.s32.totalorder %s2139_s30, %s2132_s22 }
  0x6e   : > { %p2136_p10 = pneg %p2135_p8  ;;  %p2142_p13 = por %p2141_p4, %p2140_p11 }
  0x70   : > { %p2143_p3 = pnand %p2142_p13, %p2136_p10 }
  0x72   : > { %2146 = shalt.err (!%p2143_p3)
}
  0x73   : > { %p2819_p5 = scmp.ne.s32.totalorder %s2811_s18, 0  ;;  %p2820_p1 = scmp.ne.s32.totalorder %s2817_s19, 0 }
  0x74   : > { %s2497_s11 = sand.u32 (!%p2820_p1), 1, %s2209_s25   ;;  %p2821_p13 = scmp.ne.s32.totalorder (!%p2820_p1), %s2806_s1, 0 }
  0x75   : > { %1972 = dma.hbm_to_vmem [thread:$0]  (!%p2819_p5), %s2472_s26, 32, %s551_s23, %s2397_s17  }
  0x76   : > { %559 = sbr.rel (%p2820_p1) target bundleno = 2652 (0xa5c), region = 88  ;;  %s1760_s2 = sshll.u32 (!%p2820_p1), %s2497_s11, 2 }
  0x77   : > { %s562_s12 = scalar_lea.sflag (!%p2820_p1), [#allocation3], %s2497_s11  ;;  %s2501_s20 = scalar_lea.vmem (!%p2820_p1), [#allocation2], %s1760_s2 }
  0x7d   : > { %2192 = dma.done.wait (%p2821_p13), %s562_s12, 64  }
  0x7e   : > { %2194 = vsyncadd (%p2821_p13), %s562_s12, 4294967232  ;;  %s570_s17 = sand.u32 1, %s2342_s28   ;;  %s2508_s19 = scalar_lea.vmem [#allocation5], %s1760_s2 }
  0x7f   : > { %s571_s18 = scalar_lea.sflag [#allocation6], %s570_s17 }
  0x80   : > { %2196 = dma.done.wait (%p2821_p13), %s571_s18, 96  }
  0x81   : > { %2198 = vsyncadd (%p2821_p13), %s571_s18, 4294967200  ;;  %p648_p2 = scmp.lt.s32.totalorder %s2342_s28, 1  ;;  %v2222_v0 = vmov 0.0   ;;  %vm2223_vm0 = vmmov 0   ;;  %s2822_s21 = sld [smem:[#allocation18_spill]]  ;;  %v2019_v1 = vld [vmem:[%s2765_s4] sm:$0xff]  }
  0x82   : > { %1847 = vmatprep.subr.bf16.mxu0 %v2222_v0  ;;  %1851 = vmatprep.mubr.msk.bf16.mxu0 %vm2223_vm0, %v2222_v0  ;;  %v2020_v2 = vld [vmem:[%s2765_s4 + $0x8] sm:$0xff]   ;;  %vm673_vm1 = vcmask 261120   ;;  %v2021_v4 = vld [vmem:[%s2766_s5] sm:$0xff]   ;;  %vm841_vm2 = vcmask 64512   ;;  %s2224_s18 = smov 112   ;;  %vm904_vm4 = vcmask 1043456  }
  0x83   : > { %s649_s26 = scalar_select %p648_p2, %s2342_s28, 1  ;;  %1871 = vmatprep.subr.bf16.mxu1 %v2222_v0  ;;  %1873 = vmatprep.mubr.msk.bf16.mxu1 %vm2223_vm0, %v2222_v0  ;;  %v2022_v6 = vld [vmem:[%s2766_s5 + $0x8] sm:$0xff]   ;;  %v655_v7 = vld [vmem:[%s2501_s20] sm:$0xf]  ;;  %vm1297_vm5 = vcmask 130048   ;;  %vm1299_vm6 = vcmask 195584  }
  0x84   : > { %1848 = vmatpush3.bf16.msra.mxu0 %v2019_v1  ;;  %s2225_s20 = smov 120   ;;  %v2023_v19 = vld [vmem:[%s2767_s6] sm:$0xff]   ;;  %v2024_v20 = vld [vmem:[%s2767_s6 + $0x8] sm:$0xff]   ;;  %s2227_s24 = smov 8  }
  0x85   : > { %s1764_s23 = sshll.u32 %s649_s26, 3  ;;  %1849 = vmatprep.subr.bf16.mxu0 %v2222_v0  ;;  %s2226_s26 = smov 104   ;;  %v656_v21 = vld [vmem:[%s2508_s19] sm:$0xf] }
  0x86   : > { %s1762_s19 = sshll.u32 %s2497_s11, 1  ;;  %s2228_s2 = smov 16  }
  0x87   : > { %s651_s10 = scalar_lea.vmem %s2822_s21, %s1764_s23  ;;  %s2229_s12 = smov 24  }
  0x88   : > { %v2531_v3 = vld [vmem:[%s651_s10] sm:$0xff]  ;;  %1850 = vmatpush3.bf16.msra.mxu0 %v2020_v2  ;;  %s583_s10 = scalar_lea.vmem [#allocation7], %s1762_s19  ;;  %s2825_s0 = sld [smem:[#allocation21_spill]] }
  0x89   : > { %v654_v5 = vpack.c.bf16 %v2531_v3, %v2531_v3  ;;  %1855 = vmatprep.subr.bf16.mxu0 %v2222_v0  ;;  %v838_v31 = vld [vmem:[%s583_s10] sm:$0x3]  ;;  %s2828_s17 = sld [smem:[#allocation16_spill]]  ;;  %s1804_s21 = sshll.u32 %s2342_s28, 7 }
  0x8a   : > { %v839_v32 = vunpack.c.0.s8 %v838_v31  ;;  %s2830_s1 = sld [smem:[#allocation23_spill]]  ;;  %s2230_s28 = smov [#allocation8]  }
  0x8b   : > { %1852 = vmatmul.mubr.msk.bf16.vlgmr.msra.gmra.mrb[0].mxu0 %vm673_vm1, %v654_v5 }
  0x8c   : > { %1856 = vmatpush3.bf16.msra.mxu0 %v2021_v4  ;;  %1859 = vmatprep.mubr.msk.bf16.mxu0 %vm2223_vm0, %v2222_v0  ;;  %vm2591_vm3 = vcmp.eq.s32.totalorder %v839_v32, 0 }
  0x8d   : > { %1857 = vmatprep.subr.bf16.mxu0 %v2222_v0 }
  0x8f   : > { %p2833_p9 = scmp.ne.s32.totalorder %s2828_s17, 0 }
  0x90   : > { %1858 = vmatpush3.bf16.msra.mxu0 %v2022_v6 }
  0x91   : > { %1863 = vmatprep.subr.bf16.mxu0 %v2222_v0 }
  0x93   : > { %1860 = vmatmul.mubr.msk.bf16.vlgmr.msra.gmra.mrb[4].mxu0 %vm673_vm1, %v655_v7 }
  0x94   : > { %1867 = vmatprep.mubr.msk.bf16.mxu0 %vm2223_vm0, %v2222_v0  ;;  %1864 = vmatpush3.bf16.msra.mxu0 %v2023_v19 }
  0x95   : > { %1865 = vmatprep.subr.bf16.mxu0 %v2222_v0 }
  0x98   : > { %1866 = vmatpush3.bf16.msra.mxu0 %v2024_v20 }
  0x99   : > { %1877 = vmatprep.subr.bf16.mxu0 %v2222_v0 }
  0x9b   : > { %1868 = vmatmul.mubr.msk.bf16.vlgmr.msra.gmra.mrb[8].mxu0 %vm673_vm1, %v656_v21 }
  0x9c   : > { %1879 = vmatprep.mubr.msk.bf16.mxu0 %vm2223_vm0, %v2222_v0 }
 0x15e   : > { %v711_v8 = vpop.f32.mrb[0].mxu0 }
 0x15f   : > { %v1853_v9 = vpop.f32.mrb[1].mxu0  ;;  %v835_v18 = vpack.c.bf16 %v711_v8, %v711_v8 }
 0x160   : > { %v714_v10 = vpop.f32.mrb[2].mxu0 }
 0x161   : > { %v1854_v11 = vpop.f32.mrb[3].mxu0 }
 0x166   : > { %v770_v12 = vpop.f32.mrb[4].mxu0 }
 0x167   : > { %v836_v13 = vpack.c.bf16 %v770_v12, %v770_v12  ;;  %v1861_v14 = vpop.f32.mrb[5].mxu0 }
 0x168   : > { %v773_v15 = vpop.f32.mrb[6].mxu0 }
 0x169   : > { %1064 = vrot.lane.b32.xlu1 %v836_v13, %s2224_s18  ;;  %952 = vrot.lane.b32.xlu0 %v836_v13, %s2225_s20  ;;  %v1862_v16 = vpop.f32.mrb[7].mxu0  ;;  %v846_v17 = vsel %vm841_vm2, %v836_v13, 0 }
 0x16a   : > { %1872 = vmatpush3.bf16.xpose.msra.mxu1 %v846_v17 }
 0x16b   : > { %1883 = vmatprep.subr.bf16.mxu1 %v2222_v0 }
 0x16d   : > { %1062 = vrot.lane.b32.xlu1 %v835_v18, %s2224_s18  ;;  %949 = vrot.lane.b32.xlu0 %v835_v18, %s2225_s20 }
 0x16e   : > { %v829_v40 = vpop.f32.mrb[8].mxu0 }
 0x16f   : > { %v837_v41 = vpack.c.bf16 %v829_v40, %v829_v40  ;;  %v1869_v42 = vpop.f32.mrb[9].mxu0 }
 0x170   : > { %v832_v43 = vpop.f32.mrb[10].mxu0 }
 0x171   : > { %1173 = vrot.lane.b32.xlu1 %v835_v18, %s2226_s26  ;;  %1175 = vrot.lane.b32.xlu0 %v836_v13, %s2226_s26  ;;  %v1870_v44 = vpop.f32.mrb[11].mxu0  ;;  %v906_v45 = vsel %vm904_vm4, %v837_v41, 0 }
 0x172   : > { %1874 = vmatmul.mubr.msk.bf16.vlgmr.msra.gmra.mrb[0].mxu1 %vm841_vm2, %v835_v18  ;;  %1878 = vmatpush3.bf16.msra.mxu0 %v906_v45 }
 0x173   : > { %1885 = vmatprep.mubr.msk.bf16.mxu1 %vm2223_vm0, %v2222_v0  ;;  %1889 = vmatprep.subr.bf16.mxu0 %v2222_v0 }
 0x1db   : > { %v953_v22 = vpop.permute.xlu0 %952  ;;  %v1065_v24 = vpop.permute.xlu1 %1064 }
 0x1dc   : > { %v958_v23 = vsel %vm841_vm2, %v953_v22, 0  ;;  %v1070_v26 = vsel %vm841_vm2, %v1065_v24, 0 }
 0x1dd   : > { %1884 = vmatpush3.bf16.xpose.msra.mxu1 %v958_v23 }
 0x1de   : > { %1895 = vmatprep.subr.bf16.mxu1 %v2222_v0 }
 0x1df   : > { %v950_v25 = vpop.permute.xlu0 %949  ;;  %v1063_v28 = vpop.permute.xlu1 %1062 }
 0x1e3   : > { %v1176_v27 = vpop.permute.xlu0 %1175  ;;  %v1174_v30 = vpop.permute.xlu1 %1173 }
 0x1e4   : > { %1886 = vmatmul.mubr.msk.bf16.vlgmr.msra.gmra.mrb[4].mxu1 %vm841_vm2, %v950_v25  ;;  %v1181_v29 = vsel %vm841_vm2, %v1176_v27, 0 }
 0x1e5   : > { %1896 = vmatpush3.bf16.xpose.msra.mxu1 %v1070_v26  ;;  %1897 = vmatprep.mubr.msk.bf16.mxu1 %vm2223_vm0, %v2222_v0 }
 0x1e6   : > { %1907 = vmatprep.subr.bf16.mxu1 %v2222_v0 }
 0x1ec   : > { %1898 = vmatmul.mubr.msk.bf16.vlgmr.msra.gmra.mrb[8].mxu1 %vm841_vm2, %v1063_v28 }
 0x1ed   : > { %1908 = vmatpush3.bf16.xpose.msra.mxu1 %v1181_v29  ;;  %1909 = vmatprep.mubr.msk.bf16.mxu1 %vm2223_vm0, %v2222_v0 }
 0x1ee   : > { %1919 = vmatprep.subr.bf16.mxu1 %v2222_v0 }
 0x1f4   : > { %1910 = vmatmul.mubr.msk.bf16.vlgmr.msra.gmra.mrb[12].mxu1 %vm841_vm2, %v1174_v30 }
 0x1f5   : > { %1923 = vmatprep.mubr.msk.bf16.mxu1 %vm2223_vm0, %v2222_v0 }
 0x245   : > { %v882_v34 = vpop.f32.mrb[0].mxu1 }
 0x246   : > { %v888_v35 = vsel %vm2591_vm3, -1e+20, %v882_v34  ;;  %v1875_v36 = vpop.f32.mrb[1].mxu1 }
 0x247   : > { %v885_v37 = vpop.f32.mrb[2].mxu1  ;;  %v889_v38 = vsel %vm841_vm2, %v888_v35, -inf }
 0x248   : > { %890 = vmax.xlane.f32.xlu0 %v889_v38  ;;  %v1876_v39 = vpop.f32.mrb[3].mxu1 }
 0x2b7   : > { %v994_v46 = vpop.f32.mrb[4].mxu1 }
 0x2b8   : > { %v1000_v47 = vsel %vm2591_vm3, -1e+20, %v994_v46  ;;  %v1887_v48 = vpop.f32.mrb[5].mxu1 }
 0x2b9   : > { %v997_v49 = vpop.f32.mrb[6].mxu1  ;;  %v1001_v50 = vsel %vm841_vm2, %v1000_v47, -inf  ;;  %v2025_v48 = vld [vmem:[%s2768_s7] sm:$0xff]  }
 0x2ba   : > { %1002 = vmax.xlane.f32.xlu1 %v1001_v50  ;;  %v1888_v51 = vpop.f32.mrb[7].mxu1  ;;  %1920 = vmatpush3.bf16.msra.mxu1 %v2025_v48 }
 0x2bb   : > { %1921 = vmatprep.subr.bf16.mxu1 %v2222_v0 }
 0x2bf   : > { %v1106_v52 = vpop.f32.mrb[8].mxu1 }
 0x2c0   : > { %v1112_v53 = vsel %vm2591_vm3, -1e+20, %v1106_v52  ;;  %v1899_v54 = vpop.f32.mrb[9].mxu1 }
 0x2c1   : > { %v1109_v55 = vpop.f32.mrb[10].mxu1  ;;  %v1113_v56 = vsel %vm841_vm2, %v1112_v53, -inf }
 0x2c2   : > { %1114 = vmax.xlane.f32.xlu0 %v1113_v56  ;;  %v1900_v57 = vpop.f32.mrb[11].mxu1 }
 0x2c7   : > { %v1217_v58 = vpop.f32.mrb[12].mxu1 }
 0x2c8   : > { %v1223_v59 = vsel %vm2591_vm3, -1e+20, %v1217_v58  ;;  %v1911_v60 = vpop.f32.mrb[13].mxu1 }
 0x2c9   : > { %v1220_v61 = vpop.f32.mrb[14].mxu1  ;;  %v1224_v62 = vsel %vm841_vm2, %v1223_v59, -inf }
 0x2ca   : > { %1225 = vmax.xlane.f32.xlu0 %v1224_v62  ;;  %v1912_v63 = vpop.f32.mrb[15].mxu1 }
 0x2d5   : > { %v891_v1 = vpop.xlane.xlu0 %890 }
 0x2d6   : > { %v892_v2 = vsub.f32 %v888_v35, %v891_v1 }
 0x2d8   : > { %v893_v4 = vmul.f32 1.442695, %v892_v2 }
 0x2da   : > { %2037 = vpow2.f32 %v893_v4 }
 0x2e4   : > { %v2038_v5 = vpop.eup %2037 }
 0x2e5   : > { %v895_v6 = vsel %vm841_vm2, %v2038_v5, 0.0 }
 0x2e6   : > { %896 = vadd.xlane.f32.xlu1 %v895_v6 }
 0x2f7   : > { %1014 = vrot.lane.b32.xlu1 %v837_v41, %s2225_s20 }
 0x347   : > { %v1003_v7 = vpop.xlane.xlu1 %1002 }
 0x348   : > { %v1004_v8 = vsub.f32 %v1000_v47, %v1003_v7  ;;  %v1782_v7 = vld [vmem:[%s2769_s8] ss:$0 sm:$0xff] }
 0x34a   : > { %v1005_v9 = vmul.f32 1.442695, %v1004_v8 }
 0x34c   : > { %2039 = vpow2.f32 %v1005_v9 }
 0x34f   : > { %v1115_v10 = vpop.xlane.xlu0 %1114 }
 0x350   : > { %v1116_v11 = vsub.f32 %v1112_v53, %v1115_v10  ;;  %v2026_v53 = vld [vmem:[%s2768_s7 + $0x8] sm:$0xff]  }
 0x351   : > { %1922 = vmatpush3.bf16.msra.mxu1 %v2026_v53 }
 0x352   : > { %v1117_v12 = vmul.f32 1.442695, %v1116_v11  ;;  %1935 = vmatprep.subr.bf16.mxu1 %v2222_v0 }
 0x354   : > { %2041 = vpow2.f32 %v1117_v12 }
 0x356   : > { %v2040_v13 = vpop.eup %2039 }
 0x357   : > { %v1226_v14 = vpop.xlane.xlu0 %1225  ;;  %v1007_v15 = vsel %vm841_vm2, %v2040_v13, 0.0 }
 0x358   : > { %v1227_v16 = vsub.f32 %v1223_v59, %v1226_v14  ;;  %1008 = vadd.xlane.f32.xlu0 %v1007_v15 }
 0x35a   : > { %v1228_v17 = vmul.f32 1.442695, %v1227_v16 }
 0x35c   : > { %2043 = vpow2.f32 %v1228_v17 }
 0x35e   : > { %v2042_v18 = vpop.eup %2041 }
 0x35f   : > { %v1119_v19 = vsel %vm841_vm2, %v2042_v18, 0.0 }
 0x360   : > { %1120 = vadd.xlane.f32.xlu1 %v1119_v19 }
 0x366   : > { %v2044_v20 = vpop.eup %2043 }
 0x367   : > { %v1230_v21 = vsel %vm841_vm2, %v2044_v20, 0.0 }
 0x368   : > { %1231 = vadd.xlane.f32.xlu0 %v1230_v21  ;;  %v2028_v21 = vld [vmem:[%s2774_s13 + $0x8] sm:$0xff]  }
 0x371   : > { %1236 = vrot.lane.b32.xlu1 %v837_v41, %s2226_s26  ;;  %s2829_s26 = sld [smem:[#allocation22_spill]] }
 0x373   : > { %v897_v22 = vpop.xlane.xlu1 %896 }
 0x374   : > { %2045 = vrcp.f32 %v897_v22  ;;  %v2030_v22 = vld [vmem:[%s2776_s15 + $0x8] sm:$0xff]  }
 0x377   : > { %v1015_v24 = vpop.permute.xlu1 %1014 }
 0x378   : > { %v1020_v27 = vsel %vm904_vm4, %v1015_v24, 0  ;;  %v2032_v24 = vld [vmem:[%s2776_s15 + $0x18] sm:$0xff]  }
 0x37e   : > { %v2046_v23 = vpop.eup %2045  ;;  %1125 = vrot.lane.b32.xlu0 %v837_v41, %s2224_s18 }
 0x37f   : > { %v899_v25 = vmul.f32 %v2046_v23, %v2038_v5  ;;  %v2031_v23 = vld [vmem:[%s2776_s15 + $0x10] sm:$0xff]  }
 0x381   : > { %v900_v26 = vpack.c.bf16 %v899_v25, %v899_v25  ;;  %v2033_v25 = vld [vmem:[%s2776_s15 + $0x20] sm:$0xff]  }
 0x383   : > { %1880 = vmatmul.mubr.msk.bf16.vlgmr.msra.gmra.mrb[12].mxu0 %vm841_vm2, %v900_v26  ;;  %v2034_v26 = vld [vmem:[%s2776_s15 + $0x28] sm:$0xff]  }
 0x384   : > { %1890 = vmatpush3.bf16.msra.mxu0 %v1020_v27  ;;  %1891 = vmatprep.mubr.msk.bf16.mxu0 %vm2223_vm0, %v2222_v0 }
 0x385   : > { %1901 = vmatprep.subr.bf16.mxu0 %v2222_v0 }
 0x3e5   : > { %v1009_v28 = vpop.xlane.xlu0 %1008 }
 0x3e6   : > { %2047 = vrcp.f32 %v1009_v28 }
 0x3ed   : > { %v1121_v29 = vpop.xlane.xlu1 %1120 }
 0x3ee   : > { %2049 = vrcp.f32 %v1121_v29 }
 0x3f0   : > { %v2048_v30 = vpop.eup %2047 }
 0x3f1   : > { %v1011_v31 = vmul.f32 %v2048_v30, %v2040_v13  ;;  %v1237_v38 = vpop.permute.xlu1 %1236 }
 0x3f2   : > { %v1242_v40 = vsel %vm904_vm4, %v1237_v38, 0  ;;  %v2036_v38 = vld [vmem:[%s2776_s15 + $0x38] sm:$0xff]  }
 0x3f3   : > { %v1012_v32 = vpack.c.bf16 %v1011_v31, %v1011_v31  ;;  %v1786_v31 = vld [vmem:[%s2770_s9] ss:$0 sm:$0xff] }
 0x3f5   : > { %v1232_v33 = vpop.xlane.xlu0 %1231  ;;  %1892 = vmatmul.mubr.msk.bf16.vlgmr.msra.gmra.mrb[16].mxu0 %vm841_vm2, %v1012_v32 }
 0x3f6   : > { %2051 = vrcp.f32 %v1232_v33  ;;  %1903 = vmatprep.mubr.msk.bf16.mxu0 %vm2223_vm0, %v2222_v0  ;;  %v1787_v33 = vld [vmem:[%s2825_s0] ss:$0 sm:$0xff] }
 0x3f8   : > { %v2050_v34 = vpop.eup %2049 }
 0x3f9   : > { %v1123_v35 = vmul.f32 %v2050_v34, %v2042_v18  ;;  %v1126_v36 = vpop.permute.xlu0 %1125 }
 0x3fa   : > { %v1131_v37 = vsel %vm904_vm4, %v1126_v36, 0 }
 0x3fb   : > { %1902 = vmatpush3.bf16.msra.mxu0 %v1131_v37  ;;  %v1124_v39 = vpack.c.bf16 %v1123_v35, %v1123_v35  ;;  %v2035_v37 = vld [vmem:[%s2776_s15 + $0x30] sm:$0xff]  }
 0x3fc   : > { %1913 = vmatprep.subr.bf16.mxu0 %v2222_v0 }
 0x3fe   : > { %1904 = vmatmul.mubr.msk.bf16.vlgmr.msra.gmra.mrb[20].mxu0 %vm841_vm2, %v1124_v39 }
 0x3ff   : > { %1914 = vmatpush3.bf16.msra.mxu0 %v1242_v40  ;;  %1915 = vmatprep.mubr.msk.bf16.mxu0 %vm2223_vm0, %v2222_v0 }
 0x400   : > { %v2052_v41 = vpop.eup %2051  ;;  %1927 = vmatprep.subr.bf16.mxu0 %v2222_v0 }
 0x401   : > { %v1234_v42 = vmul.f32 %v2052_v41, %v2044_v20  ;;  %v2027_v20 = vld [vmem:[%s2774_s13] sm:$0xff]  }
 0x403   : > { %v1235_v43 = vpack.c.bf16 %v1234_v42, %v1234_v42 }
 0x406   : > { %1916 = vmatmul.mubr.msk.bf16.vlgmr.msra.gmra.mrb[24].mxu0 %vm841_vm2, %v1235_v43 }
 0x407   : > { %1931 = vmatprep.mubr.msk.bf16.mxu0 %vm2223_vm0, %v2222_v0  ;;  %1928 = vmatpush3.bf16.msra.mxu0 %v2027_v20 }
 0x408   : > { %1929 = vmatprep.subr.bf16.mxu0 %v2222_v0 }
 0x40b   : > { %1930 = vmatpush3.bf16.msra.mxu0 %v2028_v21 }
 0x456   : > { %v942_v44 = vpop.f32.mrb[12].mxu0 }
 0x457   : > { %v1881_v45 = vpop.f32.mrb[13].mxu0 }
 0x458   : > { %v945_v46 = vpop.f32.mrb[14].mxu0 }
 0x459   : > { %v1882_v47 = vpop.f32.mrb[15].mxu0 }
 0x4c8   : > { %v1056_v49 = vpop.f32.mrb[16].mxu0 }
 0x4c9   : > { %1285 = vrot.lane.b32.xlu1 %v1056_v49, %s2227_s24  ;;  %v1893_v50 = vpop.f32.mrb[17].mxu0  ;;  %s2826_s24 = sld [smem:[#allocation24_spill]] }
 0x4ca   : > { %v1059_v51 = vpop.f32.mrb[18].mxu0 }
 0x4cb   : > { %v1894_v52 = vpop.f32.mrb[19].mxu0 }
 0x4cf   : > { %v1788_v39 = vld [vmem:[%s2826_s24] ss:$0 sm:$0xff]  ;;  %s2831_s24 = sld [smem:[#allocation26_spill]] }
 0x4d1   : > { %v1167_v54 = vpop.f32.mrb[20].mxu0 }
 0x4d2   : > { %1289 = vrot.lane.b32.xlu0 %v1167_v54, %s2228_s2  ;;  %v1905_v55 = vpop.f32.mrb[21].mxu0  ;;  %s2827_s2 = sld [smem:[#allocation25_spill]] }
 0x4d3   : > { %v1170_v56 = vpop.f32.mrb[22].mxu0 }
 0x4d4   : > { %v1906_v57 = vpop.f32.mrb[23].mxu0 }
 0x4d5   : > { %s2832_s16 = smov %s2831_s24  ;;  %s2716_s30 = scalar_lea.hbm %s2831_s24, %s1804_s21 }
 0x4d9   : > { %v1278_v58 = vpop.f32.mrb[24].mxu0 }
 0x4da   : > { %1293 = vrot.lane.b32.xlu1 %v1278_v58, %s2229_s12  ;;  %v1917_v59 = vpop.f32.mrb[25].mxu0  ;;  %s1763_s12 = sshll.u32 %s2497_s11, 3 }
 0x4db   : > { %v1281_v60 = vpop.f32.mrb[26].mxu0  ;;  %s647_s19 = scalar_lea.vmem [#allocation8], %s1763_s12  ;;  %s2151_s12 = sshll.u32 %s2230_s28, 4  ;;  %s2152_s12 = int_to_ptr.vmem [resolvable:$false] %s2151_s12 }
 0x4dc   : > { %v1918_v61 = vpop.f32.mrb[27].mxu0  ;;  %s1625_s10 = sshll.u32 %s647_s19, 4  ;;  %s2153_s20 = scalar_lea.vmem %s2152_s12, 256  ;;  %s2718_s10 = int_to_ptr.vmem [resolvable:$true] %s1625_s10 }
 0x4dd   : > { %s2147_s18 = scalar_lea.vmem %s2718_s10, 128  ;;  %p2154_p0 = scmp.lt.s32.totalorder %s2718_s10, %s2152_s12 }
 0x4de   : > { %p2148_p7 = scmp.ne.s32.totalorder %s2718_s10, %s2147_s18  ;;  %p2155_p8 = scmp.lt.s32.totalorder %s2153_s20, %s2147_s18 }
 0x4e0   : > { %p2149_p6 = pnand %p2148_p7, %p2833_p9  ;;  %p2156_p10 = por %p2155_p8, %p2154_p0 }
 0x4e2   : > { %p2150_p12 = pneg %p2149_p6 }
 0x4e4   : > { %p2157_p11 = pnand %p2156_p10, %p2150_p12 }
 0x53b   : > { %v1286_v62 = vpop.permute.xlu1 %1285 }
 0x53c   : > { %v1296_v1 = vsel %vm841_vm2, %v942_v44, %v1286_v62 }
 0x544   : > { %v1290_v63 = vpop.permute.xlu0 %1289 }
 0x545   : > { %v1298_v2 = vsel %vm1297_vm5, %v1296_v1, %v1290_v63  ;;  %v1801_v63 = vld [vmem:[%s2829_s26] ss:$0 sm:$0xff] }
 0x54c   : > { %v1294_v4 = vpop.permute.xlu1 %1293 }
 0x54d   : > { %v1300_v5 = vsel %vm1299_vm6, %v1298_v2, %v1294_v4  ;;  %v1802_v2 = vld [vmem:[%s2830_s1] ss:$0 sm:$0xff] }
 0x54e   : > { %v1301_v6 = vpack.c.bf16 %v1300_v5, %v1300_v5 }
 0x550   : > { %1924 = vmatmul.mubr.msk.bf16.vlgmr.msra.gmra.mrb[16].mxu1 %vm673_vm1, %v1301_v6 }
 0x551   : > { %1951 = vmatprep.mubr.msk.bf16.mxu1 %vm2223_vm0, %v2222_v0 }
 0x623   : > { %v1362_v8 = vpop.f32.mrb[16].mxu1 }
 0x624   : > { %v1363_v9 = vadd.f32 %v1782_v7, %v1362_v8  ;;  %v1925_v10 = vpop.f32.mrb[17].mxu1 }
 0x625   : > { %v1365_v11 = vpop.f32.mrb[18].mxu1 }
 0x626   : > { %v1926_v12 = vpop.f32.mrb[19].mxu1  ;;  %v1369_v13 = vadd.f32 %v1363_v9, %v2531_v3  ;;  %v2029_v3 = vld [vmem:[%s2776_s15] sm:$0xff]  }
 0x627   : > { %1936 = vmatpush3.bf16.msra.mxu1 %v2029_v3 }
 0x628   : > { %v1372_v14 = vsel %vm673_vm1, %v1369_v13, 0.0  ;;  %1937 = vmatprep.subr.bf16.mxu1 %v2222_v0 }
 0x629   : > { %1373 = vadd.xlane.f32.xlu0 %v1372_v14 }
 0x62b   : > { %1938 = vmatpush3.bf16.msra.mxu1 %v2030_v22 }
 0x62c   : > { %1939 = vmatprep.subr.bf16.mxu1 %v2222_v0 }
 0x62f   : > { %1940 = vmatpush3.bf16.msra.mxu1 %v2031_v23 }
 0x630   : > { %1941 = vmatprep.subr.bf16.mxu1 %v2222_v0 }
 0x633   : > { %1942 = vmatpush3.bf16.msra.mxu1 %v2032_v24 }
 0x634   : > { %1943 = vmatprep.subr.bf16.mxu1 %v2222_v0 }
 0x637   : > { %1944 = vmatpush3.bf16.msra.mxu1 %v2033_v25 }
 0x638   : > { %1945 = vmatprep.subr.bf16.mxu1 %v2222_v0 }
 0x63b   : > { %1946 = vmatpush3.bf16.msra.mxu1 %v2034_v26 }
 0x63c   : > { %1947 = vmatprep.subr.bf16.mxu1 %v2222_v0 }
 0x63f   : > { %1948 = vmatpush3.bf16.msra.mxu1 %v2035_v37 }
 0x640   : > { %1949 = vmatprep.subr.bf16.mxu1 %v2222_v0  ;;  %v1792_v0 = vld [vmem:[%s2827_s2] ss:$0 sm:$0xff]  ;;  %s1612_s2 = scalar_lea.sflag [#allocation4], %s2497_s11 }
 0x643   : > { %1950 = vmatpush3.bf16.msra.mxu1 %v2036_v38 }
 0x6b6   : > { %v1374_v15 = vpop.xlane.xlu0 %1373 }
 0x6b7   : > { %v1376_v16 = vmul.f32 0.03125, %v1374_v15 }
 0x6b9   : > { %v1377_v17 = vsub.f32 %v1369_v13, %v1376_v16 }
 0x6bb   : > { %v1378_v18 = vmul.f32 %v1377_v17, %v1377_v17 }
 0x6bd   : > { %v1379_v19 = vsel %vm673_vm1, %v1378_v18, 0.0 }
 0x6be   : > { %1380 = vadd.xlane.f32.xlu1 %v1379_v19 }
 0x74b   : > { %v1381_v27 = vpop.xlane.xlu1 %1380 }
 0x74c   : > { %v1382_v28 = vmul.f32 0.03125, %v1381_v27 }
 0x74e   : > { %v1383_v29 = vadd.f32 1e-05, %v1382_v28 }
 0x750   : > { %2053 = vrsqrt.f32 %v1383_v29 }
 0x75a   : > { %v2054_v30 = vpop.eup %2053 }
 0x75b   : > { %v1385_v32 = vmul.f32 %v2054_v30, %v1377_v17 }
 0x75d   : > { %v1392_v34 = vmul.f32 %v1786_v31, %v1385_v32 }
 0x75f   : > { %v1399_v35 = vadd.f32 %v1787_v33, %v1392_v34 }
 0x761   : > { %v1400_v36 = vpack.c.bf16 %v1399_v35, %v1399_v35 }
 0x763   : > { %1932 = vmatmul.mubr.msk.bf16.vlgmr.msra.gmra.mrb[28].mxu0 %vm673_vm1, %v1400_v36 }
 0x836   : > { %v1461_v40 = vpop.f32.mrb[28].mxu0 }
 0x837   : > { %v1462_v41 = vadd.f32 %v1788_v39, %v1461_v40  ;;  %v1933_v42 = vpop.f32.mrb[29].mxu0 }
 0x838   : > { %v1464_v43 = vpop.f32.mrb[30].mxu0 }
 0x839   : > { %v1467_v44 = vmax.f32 %v1462_v41, 0.0  ;;  %v1934_v45 = vpop.f32.mrb[31].mxu0 }
 0x83b   : > { %v1468_v46 = vpack.c.bf16 %v1467_v44, %v1467_v44 }
 0x83d   : > { %1952 = vmatmul.mubr.bf16.vlgmr.msra.gmra.mrb[20].mxu1 %v1468_v46 }
 0x910   : > { %v1574_v47 = vpop.f32.mrb[20].mxu1 }
 0x911   : > { %v1575_v48 = vadd.f32 %v1792_v0, %v1574_v47  ;;  %v1953_v49 = vpop.f32.mrb[21].mxu1 }
 0x912   : > { %v1577_v50 = vpop.f32.mrb[22].mxu1 }
 0x913   : > { %v1954_v51 = vpop.f32.mrb[23].mxu1  ;;  %v1580_v52 = vadd.f32 %v1575_v48, %v1399_v35 }
 0x915   : > { %v1583_v53 = vsel %vm673_vm1, %v1580_v52, 0.0 }
 0x916   : > { %1584 = vadd.xlane.f32.xlu0 %v1583_v53 }
 0x9a3   : > { %v1585_v54 = vpop.xlane.xlu0 %1584 }
 0x9a4   : > { %v1586_v55 = vmul.f32 0.03125, %v1585_v54 }
 0x9a6   : > { %v1587_v56 = vsub.f32 %v1580_v52, %v1586_v55 }
 0x9a8   : > { %v1588_v57 = vmul.f32 %v1587_v56, %v1587_v56 }
 0x9aa   : > { %v1589_v58 = vsel %vm673_vm1, %v1588_v57, 0.0 }
 0x9ab   : > { %1590 = vadd.xlane.f32.xlu0 %v1589_v58 }
 0xa38   : > { %v1591_v59 = vpop.xlane.xlu0 %1590 }
 0xa39   : > { %v1592_v60 = vmul.f32 0.03125, %v1591_v59 }
 0xa3b   : > { %v1593_v61 = vadd.f32 1e-05, %v1592_v60 }
 0xa3d   : > { %2055 = vrsqrt.f32 %v1593_v61 }
 0xa47   : > { %v2056_v62 = vpop.eup %2055 }
 0xa48   : > { %v1595_v1 = vmul.f32 %v2056_v62, %v1587_v56 }
 0xa4a   : > { %v1602_v4 = vmul.f32 %v1801_v63, %v1595_v1 }
 0xa4c   : > { %v1609_v5 = vadd.f32 %v1802_v2, %v1602_v4 }
 0xa4e   : > { %1610 = vst.msk [vmem:[%s647_s19] sm:$0xff] %vm673_vm1, %v1609_v5 }
 0xa4f   : > { %2160 = shalt.err (!%p2157_p11)
}
 0xa50   : > { %s2161_s11 = scalar_lea.hbm %s2716_s30, 128  ;;  %s2165_s0 = scalar_lea.hbm %s2832_s16, 256 }
 0xa51   : > { %p2162_p4 = scmp.ne.s32.totalorder %s2716_s30, %s2161_s11  ;;  %p2166_p1 = scmp.lt.u32.totalorder %s2716_s30, %s2832_s16 }
 0xa52   : > { %p2167_p13 = scmp.lt.u32.totalorder %s2165_s0, %s2161_s11  ;;  %p2169_p7 = scmp.lt.u32.totalorder %s2161_s11, %s2716_s30 }
 0xa53   : > { %p2163_p3 = pnand %p2162_p4, %p2833_p9 }
 0xa54   : > { %p2168_p2 = por %p2167_p13, %p2166_p1 }
 0xa55   : > { %p2164_p5 = pneg %p2163_p3 }
 0xa56   : > { %p2170_p6 = por %p2169_p7, %p2168_p2 }
 0xa58   : > { %p2171_p12 = pnand %p2170_p6, %p2164_p5 }
 0xa5a   : > { %2174 = shalt.err (!%p2171_p12)
}
 0xa5b   : > { %1961 = dma.vmem_to_hbm [thread:$0]  (%p2833_p9), %s2718_s10, 128, %s2716_s30, %s1612_s2  }
 0xa5c PF: > { %s2834_s19 = sld [smem:[#allocation12_spill]]  ;;  %s2835_s14 = sld [smem:[#allocation17_spill]] }
 0xa5d   : > { %p2837_p8 = scmp.ge.s32.totalorder %s2217_s27, 2 }
 0xa62   : > { %s1637_s22 = sand.u32 1, %s2834_s19   ;;  %p2836_p0 = scmp.ne.s32.totalorder %s2835_s14, 0 }
 0xa63   : > { %s1638_s24 = scalar_lea.sflag [#allocation4], %s1637_s22 }
 0xa64   : > { %p1974_p10 = pnand %p2837_p8, %p2836_p0 }
 0xa66   : > { %2200 = dma.done.wait (!%p1974_p10), %s1638_s24, 128  }
 0xa67   : > { %2202 = vsyncadd (!%p1974_p10), %s1638_s24, 4294967168  ;;  %s2838_s27 = sld [smem:[#allocation14_spill]]  ;;  %s2839_s18 = sld [smem:[#allocation13_spill]] }
 0xa68   : > { %s2840_s26 = sld [smem:[#allocation15_spill]]  ;;  %s2841_s24 = smov %s2209_s25 }
 0xa6d   : > { %p33_p11 = scmp.ge.s32.totalorder %s2838_s27, 4   ;;  %s2842_s25 = smov %s2839_s18 }
 0xa6f   :  { %35 = sbr.rel (!%p33_p11) target bundleno = 17 (0x11), region = 160 }
 0xa76   :  { %1643 = vsyncpa [#allocation3], 1 }
 0xa77   :  { %1645 = vsyncpa [#allocation3 + $0x1], 1 }
 0xa78   :  { %1646 = vsyncpa [#allocation6], 1 }
 0xa79   :  { %1648 = vsyncpa [#allocation6 + $0x1], 1 }
 0xa7a   :  { %1649 = vsyncpa [#allocation4], 1 }
 0xa7b   :  { %1651 = vsyncpa [#allocation4 + $0x1], 1 }

// kernel: tpu_custom_call.1
= control target key start
LH: loop header
LB: loop body
LE: loop exit
PB: predicated region body
PF: predicated region fallthrough
CT: control target
= control target key end

     0   :  { %s2761_s0 = inlined_call_operand.vmem [shape: f32[2,8,32], index: 0, kind: input, shape index: {}]   ;;  %s2762_s1 = inlined_call_operand.hbm [shape: bf16[2,8,32], index: 1, kind: input, shape index: {}]   ;;  %s2763_s2 = inlined_call_operand.hbm [shape: bf16[2,8,32], index: 2, kind: input, shape index: {}]   ;;  %s2764_s3 = inlined_call_operand.hbm [shape: s8[2,8,8], index: 3, kind: input, shape index: {}]   ;;  %s2765_s4 = inlined_call_operand.vmem [shape: bf16[32,32], index: 4, kind: input, shape index: {}]   ;;  %s2766_s5 = inlined_call_operand.vmem [shape: bf16[32,32], index: 5, kind: input, shape index: {}]   ;;  %s2767_s6 = inlined_call_operand.vmem [shape: bf16[32,32], index: 6, kind: input, shape index: {}]   ;;  %s2768_s7 = inlined_call_operand.vmem [shape: bf16[32,32], index: 7, kind: input, shape index: {}]   ;;  %s2769_s8 = inlined_call_operand.vmem [shape: f32[1,32], index: 8, kind: input, shape index: {}]   ;;  %s2770_s9 = inlined_call_operand.vmem [shape: f32[1,32], index: 9, kind: input, shape index: {}]   ;;  %s2771_s10 = inlined_call_operand.vmem [shape: f32[1,32], index: 10, kind: input, shape index: {}]   ;;  %s2772_s11 = inlined_call_operand.vmem [shape: f32[1,32], index: 11, kind: input, shape index: {}]   ;;  %s2773_s12 = inlined_call_operand.vmem [shape: f32[1,32], index: 12, kind: input, shape index: {}]   ;;  %s2774_s13 = inlined_call_operand.vmem [shape: bf16[32,128], index: 13, kind: input, shape index: {}]   ;;  %s2775_s14 = inlined_call_operand.vmem [shape: f32[1,128], index: 14, kind: input, shape index: {}]   ;;  %s2776_s15 = inlined_call_operand.vmem [shape: bf16[128,32], index: 15, kind: input, shape index: {}]   ;;  %s2777_s16 = inlined_call_operand.vmem [shape: f32[1,32], index: 16, kind: input, shape index: {}]   ;;  %s2778_s17 = inlined_call_operand.hbm [shape: f32[2,8,32], index: 17, kind: output, shape index: {}]  }
   0x1   :  { %2793 = sst [smem:[#allocation18_spill]] %s2761_s0 }
   0x2   :  { %2794 = sst [smem:[#allocation19_spill]] %s2762_s1 }
   0x3   :  { %2795 = sst [smem:[#allocation20_spill]] %s2763_s2 }
   0x4   :  { %2796 = sst [smem:[#allocation21_spill]] %s2771_s10 }
   0x5   :  { %2797 = sst [smem:[#allocation22_spill]] %s2772_s11 }
   0x6   :  { %2798 = sst [smem:[#allocation23_spill]] %s2773_s12 }
   0x7   :  { %2799 = sst [smem:[#allocation24_spill]] %s2775_s14 }
   0x8   :  { %2800 = sst [smem:[#allocation25_spill]] %s2777_s16 }
   0x9   :  { %2801 = sst [smem:[#allocation26_spill]] %s2778_s17 }
   0xa   :  { %22 = vsyncpa [#allocation3], 0 }
   0xb   :  { %24 = vsyncpa [#allocation3 + $0x1], 0 }
   0xc   :  { %25 = vsyncpa [#allocation6], 0 }
   0xd   :  { %27 = vsyncpa [#allocation6 + $0x1], 0 }
   0xe   :  { %28 = vsyncpa [#allocation4], 0 }
   0xf   :  { %30 = vsyncpa [#allocation4 + $0x1], 0  ;;  %s2321_s24 = smov 0   ;;  %s2323_s25 = smov 0  }
  0x10   :  { %s2325_s26 = smov 0   ;;  %s2327_s27 = smov 0  }
  0x11 LB: > { %2802 = sst [smem:[#allocation12_spill]] %s2205_s24  ;;  %s2342_s28 = sadd.s32 4294967295, %s2217_s27   ;;  %s2217_s27 = sphi %s2327_s27, %s2838_s27   ;;  %s2213_s26 = sphi %s2325_s26, %s2840_s26   ;;  %s2209_s25 = sphi %s2323_s25, %s2842_s25   ;;  %s2205_s24 = sphi %s2321_s24, %s2841_s24  }
  0x12   : > { %2803 = sst [smem:[#allocation13_spill]] %s2213_s26  ;;  %s1750_s29 = sadd.s32 4294967294, %s2217_s27  }
  0x13   : > { %s2346_s0 = sadd.s32 1, %s2217_s27   ;;  %s69_s30 = sadd.s32 1, %s2213_s26 }
  0x14   : > { %2804 = sst [smem:[#allocation14_spill]] %s2346_s0  ;;  %s66_s18 = ssub.s32 %s2217_s27, %s2346_s0 }
  0x15   : > { %p76_p0 = scmp.ne.s32.totalorder %s2213_s26, %s2209_s25  ;;  %p67_p1 = scmp.eq.s32.totalorder %s66_s18, 0 }
  0x16   : > { %p77_p2 = scmp.eq.s32.totalorder %s2217_s27, 0  ;;  %p82_p3 = scmp.ne.s32.totalorder %s2209_s25, %s2205_s24 }
  0x17   : > { %p83_p4 = scmp.eq.s32.totalorder %s2342_s28, 0  ;;  %p431_p7 = scmp.eq.s32.totalorder %s2342_s28, 1 }
  0x18   : > { %s2358_s19 = scalar_select %p67_p1, %s2213_s26, %s69_s30  }
  0x19   : > { %p78_p5 = por %p77_p2, %p76_p0  ;;  %p2360_p6 = por %p83_p4, %p82_p3 }
  0x1a   : > { %2805 = sst [smem:[#allocation15_spill]] %s2358_s19  ;;  %p437_p8 = scmp.eq.s32.totalorder %s1750_s29, 1 }
  0x1b   : > { %s2806_s1 = scalar_select %p2360_p6, 1, 0 }
  0x1c   : > { %p1977_p10 = scmp.lt.s32.totalorder %s2217_s27, 2  ;;  %p2367_p11 = por %p431_p7, %p76_p0 }
  0x1d   : > { %p2371_p12 = por %p437_p8, %p82_p3  ;;  %s2376_s22 = sand.u32 1, %s2213_s26  }
  0x1e   : > { %s2807_s20 = scalar_select %p2367_p11, 1, 0 }
  0x1f   : > { %s2809_s21 = scalar_select %p2371_p12, 1, 0 }
  0x20   : > { %2808 = sst [smem:[#allocation16_spill]] %s2807_s20  ;;  %s2787_s23 = sshll.u32 %s2217_s27, 6 }
  0x21   : > { %2810 = sst [smem:[#allocation17_spill]] %s2809_s21  ;;  %s2786_s30 = sshll.u32 %s2376_s22, 2 }
  0x22   : > { %p2380_p13 = pnand %p1977_p10, %p78_p5  ;;  %s521_s29 = sand.u32 1, %s2217_s27  }
  0x23   : > { %s2812_s2 = sld [smem:[#allocation20_spill]]  ;;  %s525_s26 = scalar_lea.vmem [#allocation5], %s2786_s30 }
  0x24   : > { %s2811_s18 = scalar_select %p2380_p13, 1, 0 }
  0x25   : > { %s532_s21 = sshll.u32 %s525_s26, 4  ;;  %s2397_s17 = scalar_lea.sflag [#allocation6], %s521_s29  ;;  %s2394_s21 = int_to_ptr.vmem [resolvable:$true] %s532_s21 }
  0x26   : > { %p2403_p2 = pneg %p2380_p13 }
  0x29   : > { %s2390_s24 = scalar_lea.hbm %s2812_s2, %s2787_s23  ;;  %s2062_s26 = scalar_lea.hbm %s2812_s2, 128 }
  0x2a   : > { %s2057_s12 = scalar_lea.hbm %s2390_s24, 64  ;;  %p2063_p5 = scmp.lt.u32.totalorder %s2390_s24, %s2812_s2 }
  0x2b   : > { %p2058_p1 = scmp.ne.s32.totalorder %s2390_s24, %s2057_s12  ;;  %p2064_p7 = scmp.lt.u32.totalorder %s2062_s26, %s2057_s12 }
  0x2c   : > { %p2066_p10 = scmp.lt.u32.totalorder %s2057_s12, %s2390_s24 }
  0x2d   : > { %p2060_p3 = pnand %p2403_p2, %p2058_p1  ;;  %p2065_p8 = por %p2064_p7, %p2063_p5 }
  0x2f   : > { %p2061_p4 = pneg %p2060_p3  ;;  %p2067_p9 = por %p2066_p10, %p2065_p8 }
  0x31   : > { %p2068_p0 = pnand %p2067_p9, %p2061_p4 }
  0x33   : > { %2071 = shalt.err (!%p2068_p0)
}
  0x34   : > { %s2072_s29 = scalar_lea.vmem %s2394_s21, 64  ;;  %s2219_s0 = smov [#allocation5]  }
  0x35   : > { %p2073_p1 = scmp.ne.s32.totalorder %s2394_s21, %s2072_s29  ;;  %s2077_s19 = sshll.u32 %s2219_s0, 4  ;;  %s2078_s19 = int_to_ptr.vmem [resolvable:$false] %s2077_s19 }
  0x36   : > { %s2079_s23 = scalar_lea.vmem %s2078_s19, 128  ;;  %p2080_p11 = scmp.lt.s32.totalorder %s2394_s21, %s2078_s19 }
  0x37   : > { %p2075_p3 = pnand %p2073_p1, %p2403_p2  ;;  %p2081_p6 = scmp.lt.s32.totalorder %s2079_s23, %s2072_s29 }
  0x39   : > { %p2076_p12 = pneg %p2075_p3  ;;  %p2082_p5 = por %p2081_p6, %p2080_p11 }
  0x3b   : > { %p2083_p7 = pnand %p2082_p5, %p2076_p12 }
  0x3d   : > { %2086 = shalt.err (!%p2083_p7)
}
  0x3e   : > { %1969 = dma.hbm_to_vmem [thread:$0]  (!%p2380_p13), %s2390_s24, 64, %s2394_s21, %s2397_s17  }
  0x3f   : > { %p555_p9 = scmp.lt.s32.totalorder %s2217_s27, 3  ;;  %s2814_s12 = sshll.u32 %s2217_s27, 6 }
  0x40   : > { %s2815_s29 = sld [smem:[#allocation19_spill]]  ;;  %p2816_p6 = scmp.ge.s32.totalorder %s2217_s27, 1 }
  0x41   : > { %s2818_s23 = sshll.u32 %s2376_s22, 2  ;;  %s1757_s24 = sshll.u32 %s2376_s22, 1 }
  0x42   : > { %p2437_p11 = pnand %p2816_p6, %p555_p9  ;;  %s507_s2 = scalar_lea.vmem [#allocation2], %s2818_s23 }
  0x43   : > { %s514_s20 = sshll.u32 %s507_s2, 4  ;;  %s504_s21 = scalar_lea.sflag [#allocation3], %s2376_s22  ;;  %s2443_s20 = int_to_ptr.vmem [resolvable:$true] %s514_s20 }
  0x44   : > { %s2817_s19 = scalar_select %p2437_p11, 1, 0 }
  0x46   : > { %s2433_s0 = scalar_lea.hbm %s2815_s29, %s2814_s12  ;;  %s2092_s26 = scalar_lea.hbm %s2815_s29, 128 }
  0x47   : > { %s2087_s16 = scalar_lea.hbm %s2433_s0, 64  ;;  %p2093_p8 = scmp.lt.u32.totalorder %s2433_s0, %s2815_s29 }
  0x48   : > { %p2088_p12 = scmp.ne.s32.totalorder %s2433_s0, %s2087_s16  ;;  %p2094_p10 = scmp.lt.u32.totalorder %s2092_s26, %s2087_s16 }
  0x49   : > { %p2096_p3 = scmp.lt.u32.totalorder %s2087_s16, %s2433_s0 }
  0x4a   : > { %p2090_p0 = pnand %p2088_p12, %p2403_p2  ;;  %p2095_p1 = por %p2094_p10, %p2093_p8 }
  0x4c   : > { %p2091_p4 = pneg %p2090_p0  ;;  %p2097_p5 = por %p2096_p3, %p2095_p1 }
  0x4e   : > { %p2098_p7 = pnand %p2097_p5, %p2091_p4 }
  0x50   : > { %2101 = shalt.err (!%p2098_p7)
}
  0x51   : > { %s2102_s2 = scalar_lea.vmem %s2443_s20, 64  ;;  %s2220_s23 = smov [#allocation2]  }
  0x52   : > { %p2103_p9 = scmp.ne.s32.totalorder %s2443_s20, %s2102_s2  ;;  %s2107_s12 = sshll.u32 %s2220_s23, 4  ;;  %s2108_s12 = int_to_ptr.vmem [resolvable:$false] %s2107_s12 }
  0x53   : > { %s2109_s10 = scalar_lea.vmem %s2108_s12, 128  ;;  %p2110_p0 = scmp.lt.s32.totalorder %s2443_s20, %s2108_s12 }
  0x54   : > { %p2105_p6 = pnand %p2103_p9, %p2403_p2  ;;  %p2111_p11 = scmp.lt.s32.totalorder %s2109_s10, %s2102_s2 }
  0x56   : > { %p2106_p12 = pneg %p2105_p6  ;;  %p2112_p8 = por %p2111_p11, %p2110_p0 }
  0x58   : > { %p2113_p10 = pnand %p2112_p8, %p2106_p12 }
  0x5a   : > { %2116 = shalt.err (!%p2113_p10)
}
  0x5b   : > { %1966 = dma.hbm_to_vmem [thread:$0]  (!%p2380_p13), %s2433_s0, 64, %s2443_s20, %s504_s21  }
  0x5c   : > { %s1758_s14 = sshll.u32 %s2217_s27, 5  ;;  %s543_s2 = scalar_lea.vmem [#allocation7], %s1757_s24 }
  0x5d   : > { %s2472_s26 = scalar_lea.hbm %s2764_s3, %s1758_s14  ;;  %s550_s23 = sshll.u32 %s543_s2, 4  ;;  %s551_s23 = int_to_ptr.vmem [resolvable:$true] %s550_s23 }
  0x5e   : > { %s2117_s12 = scalar_lea.hbm %s2472_s26, 32  ;;  %s2122_s21 = scalar_lea.hbm %s2764_s3, 64 }
  0x5f   : > { %p2118_p11 = scmp.ne.s32.totalorder %s2472_s26, %s2117_s12  ;;  %p2123_p3 = scmp.lt.u32.totalorder %s2472_s26, %s2764_s3 }
  0x60   : > { %p2124_p5 = scmp.lt.u32.totalorder %s2122_s21, %s2117_s12  ;;  %p2126_p9 = scmp.lt.u32.totalorder %s2117_s12, %s2472_s26 }
  0x61   : > { %p2120_p4 = pnand %p2118_p11, %p2403_p2 }
  0x62   : > { %p2125_p7 = por %p2124_p5, %p2123_p3 }
  0x63   : > { %p2121_p1 = pneg %p2120_p4 }
  0x64   : > { %p2127_p6 = por %p2126_p9, %p2125_p7 }
  0x66   : > { %p2128_p12 = pnand %p2127_p6, %p2121_p1 }
  0x68   : > { %2131 = shalt.err (!%p2128_p12)
}
  0x69   : > { %s2132_s22 = scalar_lea.vmem %s551_s23, 32  ;;  %s2221_s24 = smov [#allocation7]  }
  0x6a   : > { %p2133_p0 = scmp.ne.s32.totalorder %s551_s23, %s2132_s22  ;;  %s2137_s16 = sshll.u32 %s2221_s24, 4  ;;  %s2138_s16 = int_to_ptr.vmem [resolvable:$false] %s2137_s16 }
  0x6b   : > { %s2139_s30 = scalar_lea.vmem %s2138_s16, 64  ;;  %p2140_p11 = scmp.lt.s32.totalorder %s551_s23, %s2138_s16 }
  0x6c   : > { %p2135_p8 = pnand %p2133_p0, %p2403_p2  ;;  %p2141_p4 = scmp.lt.s32.totalorder %s2139_s30, %s2132_s22 }
  0x6e   : > { %p2136_p10 = pneg %p2135_p8  ;;  %p2142_p13 = por %p2141_p4, %p2140_p11 }
  0x70   : > { %p2143_p3 = pnand %p2142_p13, %p2136_p10 }
  0x72   : > { %2146 = shalt.err (!%p2143_p3)
}
  0x73   : > { %p2819_p5 = scmp.ne.s32.totalorder %s2811_s18, 0  ;;  %p2820_p1 = scmp.ne.s32.totalorder %s2817_s19, 0 }
  0x74   : > { %s2497_s11 = sand.u32 (!%p2820_p1), 1, %s2209_s25   ;;  %p2821_p13 = scmp.ne.s32.totalorder (!%p2820_p1), %s2806_s1, 0 }
  0x75   : > { %1972 = dma.hbm_to_vmem [thread:$0]  (!%p2819_p5), %s2472_s26, 32, %s551_s23, %s2397_s17  }
  0x76   : > { %559 = sbr.rel (%p2820_p1) target bundleno = 2652 (0xa5c), region = 88  ;;  %s1760_s2 = sshll.u32 (!%p2820_p1), %s2497_s11, 2 }
  0x77   : > { %s562_s12 = scalar_lea.sflag (!%p2820_p1), [#allocation3], %s2497_s11  ;;  %s2501_s20 = scalar_lea.vmem (!%p2820_p1), [#allocation2], %s1760_s2 }
  0x7d   : > { %2192 = dma.done.wait (%p2821_p13), %s562_s12, 64  }
  0x7e   : > { %2194 = vsyncadd (%p2821_p13), %s562_s12, 4294967232  ;;  %s570_s17 = sand.u32 1, %s2342_s28   ;;  %s2508_s19 = scalar_lea.vmem [#allocation5], %s1760_s2 }
  0x7f   : > { %s571_s18 = scalar_lea.sflag [#allocation6], %s570_s17 }
  0x80   : > { %2196 = dma.done.wait (%p2821_p13), %s571_s18, 96  }
  0x81   : > { %2198 = vsyncadd (%p2821_p13), %s571_s18, 4294967200  ;;  %p648_p2 = scmp.lt.s32.totalorder %s2342_s28, 1  ;;  %v2222_v0 = vmov 0.0   ;;  %vm2223_vm0 = vmmov 0   ;;  %s2822_s21 = sld [smem:[#allocation18_spill]]  ;;  %v2019_v1 = vld [vmem:[%s2765_s4] sm:$0xff]  }
  0x82   : > { %1847 = vmatprep.subr.bf16.mxu0 %v2222_v0  ;;  %1851 = vmatprep.mubr.msk.bf16.mxu0 %vm2223_vm0, %v2222_v0  ;;  %v2020_v2 = vld [vmem:[%s2765_s4 + $0x8] sm:$0xff]   ;;  %vm673_vm1 = vcmask 261120   ;;  %v2021_v4 = vld [vmem:[%s2766_s5] sm:$0xff]   ;;  %vm841_vm2 = vcmask 64512   ;;  %s2224_s18 = smov 112   ;;  %vm904_vm4 = vcmask 1043456  }
  0x83   : > { %s649_s26 = scalar_select %p648_p2, %s2342_s28, 1  ;;  %1871 = vmatprep.subr.bf16.mxu1 %v2222_v0  ;;  %1873 = vmatprep.mubr.msk.bf16.mxu1 %vm2223_vm0, %v2222_v0  ;;  %v2022_v6 = vld [vmem:[%s2766_s5 + $0x8] sm:$0xff]   ;;  %v655_v7 = vld [vmem:[%s2501_s20] sm:$0xf]  ;;  %vm1297_vm5 = vcmask 130048   ;;  %vm1299_vm6 = vcmask 195584  }
  0x84   : > { %1848 = vmatpush3.bf16.msra.mxu0 %v2019_v1  ;;  %s2225_s20 = smov 120   ;;  %v2023_v19 = vld [vmem:[%s2767_s6] sm:$0xff]   ;;  %v2024_v20 = vld [vmem:[%s2767_s6 + $0x8] sm:$0xff]   ;;  %s2227_s24 = smov 8  }
  0x85   : > { %s1764_s23 = sshll.u32 %s649_s26, 3  ;;  %1849 = vmatprep.subr.bf16.mxu0 %v2222_v0  ;;  %s2226_s26 = smov 104   ;;  %v656_v21 = vld [vmem:[%s2508_s19] sm:$0xf] }
  0x86   : > { %s1762_s19 = sshll.u32 %s2497_s11, 1  ;;  %s2228_s2 = smov 16  }
  0x87   : > { %s651_s10 = scalar_lea.vmem %s2822_s21, %s1764_s23  ;;  %s2229_s12 = smov 24  }
  0x88   : > { %v2531_v3 = vld [vmem:[%s651_s10] sm:$0xff]  ;;  %1850 = vmatpush3.bf16.msra.mxu0 %v2020_v2  ;;  %s583_s10 = scalar_lea.vmem [#allocation7], %s1762_s19  ;;  %s2825_s0 = sld [smem:[#allocation21_spill]] }
  0x89   : > { %v654_v5 = vpack.c.bf16 %v2531_v3, %v2531_v3  ;;  %1855 = vmatprep.subr.bf16.mxu0 %v2222_v0  ;;  %v838_v31 = vld [vmem:[%s583_s10] sm:$0x3]  ;;  %s2828_s17 = sld [smem:[#allocation16_spill]]  ;;  %s1804_s21 = sshll.u32 %s2342_s28, 7 }
  0x8a   : > { %v839_v32 = vunpack.c.0.s8 %v838_v31  ;;  %s2830_s1 = sld [smem:[#allocation23_spill]]  ;;  %s2230_s28 = smov [#allocation8]  }
  0x8b   : > { %1852 = vmatmul.mubr.msk.bf16.vlgmr.msra.gmra.mrb[0].mxu0 %vm673_vm1, %v654_v5 }
  0x8c   : > { %1856 = vmatpush3.bf16.msra.mxu0 %v2021_v4  ;;  %1859 = vmatprep.mubr.msk.bf16.mxu0 %vm2223_vm0, %v2222_v0  ;;  %vm2591_vm3 = vcmp.eq.s32.totalorder %v839_v32, 0 }
  0x8d   : > { %1857 = vmatprep.subr.bf16.mxu0 %v2222_v0 }
  0x8f   : > { %p2833_p9 = scmp.ne.s32.totalorder %s2828_s17, 0 }
  0x90   : > { %1858 = vmatpush3.bf16.msra.mxu0 %v2022_v6 }
  0x91   : > { %1863 = vmatprep.subr.bf16.mxu0 %v2222_v0 }
  0x93   : > { %1860 = vmatmul.mubr.msk.bf16.vlgmr.msra.gmra.mrb[4].mxu0 %vm673_vm1, %v655_v7 }
  0x94   : > { %1867 = vmatprep.mubr.msk.bf16.mxu0 %vm2223_vm0, %v2222_v0  ;;  %1864 = vmatpush3.bf16.msra.mxu0 %v2023_v19 }
  0x95   : > { %1865 = vmatprep.subr.bf16.mxu0 %v2222_v0 }
  0x98   : > { %1866 = vmatpush3.bf16.msra.mxu0 %v2024_v20 }
  0x99   : > { %1877 = vmatprep.subr.bf16.mxu0 %v2222_v0 }
  0x9b   : > { %1868 = vmatmul.mubr.msk.bf16.vlgmr.msra.gmra.mrb[8].mxu0 %vm673_vm1, %v656_v21 }
  0x9c   : > { %1879 = vmatprep.mubr.msk.bf16.mxu0 %vm2223_vm0, %v2222_v0 }
 0x15e   : > { %v711_v8 = vpop.f32.mrb[0].mxu0 }
 0x15f   : > { %v1853_v9 = vpop.f32.mrb[1].mxu0  ;;  %v835_v18 = vpack.c.bf16 %v711_v8, %v711_v8 }
 0x160   : > { %v714_v10 = vpop.f32.mrb[2].mxu0 }
 0x161   : > { %v1854_v11 = vpop.f32.mrb[3].mxu0 }
 0x166   : > { %v770_v12 = vpop.f32.mrb[4].mxu0 }
 0x167   : > { %v836_v13 = vpack.c.bf16 %v770_v12, %v770_v12  ;;  %v1861_v14 = vpop.f32.mrb[5].mxu0 }
 0x168   : > { %v773_v15 = vpop.f32.mrb[6].mxu0 }
 0x169   : > { %1064 = vrot.lane.b32.xlu1 %v836_v13, %s2224_s18  ;;  %952 = vrot.lane.b32.xlu0 %v836_v13, %s2225_s20  ;;  %v1862_v16 = vpop.f32.mrb[7].mxu0  ;;  %v846_v17 = vsel %vm841_vm2, %v836_v13, 0 }
 0x16a   : > { %1872 = vmatpush3.bf16.xpose.msra.mxu1 %v846_v17 }
 0x16b   : > { %1883 = vmatprep.subr.bf16.mxu1 %v2222_v0 }
 0x16d   : > { %1062 = vrot.lane.b32.xlu1 %v835_v18, %s2224_s18  ;;  %949 = vrot.lane.b32.xlu0 %v835_v18, %s2225_s20 }
 0x16e   : > { %v829_v40 = vpop.f32.mrb[8].mxu0 }
 0x16f   : > { %v837_v41 = vpack.c.bf16 %v829_v40, %v829_v40  ;;  %v1869_v42 = vpop.f32.mrb[9].mxu0 }
 0x170   : > { %v832_v43 = vpop.f32.mrb[10].mxu0 }
 0x171   : > { %1173 = vrot.lane.b32.xlu1 %v835_v18, %s2226_s26  ;;  %1175 = vrot.lane.b32.xlu0 %v836_v13, %s2226_s26  ;;  %v1870_v44 = vpop.f32.mrb[11].mxu0  ;;  %v906_v45 = vsel %vm904_vm4, %v837_v41, 0 }
 0x172   : > { %1874 = vmatmul.mubr.msk.bf16.vlgmr.msra.gmra.mrb[0].mxu1 %vm841_vm2, %v835_v18  ;;  %1878 = vmatpush3.bf16.msra.mxu0 %v906_v45 }
 0x173   : > { %1885 = vmatprep.mubr.msk.bf16.mxu1 %vm2223_vm0, %v2222_v0  ;;  %1889 = vmatprep.subr.bf16.mxu0 %v2222_v0 }
 0x1db   : > { %v953_v22 = vpop.permute.xlu0 %952  ;;  %v1065_v24 = vpop.permute.xlu1 %1064 }
 0x1dc   : > { %v958_v23 = vsel %vm841_vm2, %v953_v22, 0  ;;  %v1070_v26 = vsel %vm841_vm2, %v1065_v24, 0 }
 0x1dd   : > { %1884 = vmatpush3.bf16.xpose.msra.mxu1 %v958_v23 }
 0x1de   : > { %1895 = vmatprep.subr.bf16.mxu1 %v2222_v0 }
 0x1df   : > { %v950_v25 = vpop.permute.xlu0 %949  ;;  %v1063_v28 = vpop.permute.xlu1 %1062 }
 0x1e3   : > { %v1176_v27 = vpop.permute.xlu0 %1175  ;;  %v1174_v30 = vpop.permute.xlu1 %1173 }
 0x1e4   : > { %1886 = vmatmul.mubr.msk.bf16.vlgmr.msra.gmra.mrb[4].mxu1 %vm841_vm2, %v950_v25  ;;  %v1181_v29 = vsel %vm841_vm2, %v1176_v27, 0 }
 0x1e5   : > { %1896 = vmatpush3.bf16.xpose.msra.mxu1 %v1070_v26  ;;  %1897 = vmatprep.mubr.msk.bf16.mxu1 %vm2223_vm0, %v2222_v0 }
 0x1e6   : > { %1907 = vmatprep.subr.bf16.mxu1 %v2222_v0 }
 0x1ec   : > { %1898 = vmatmul.mubr.msk.bf16.vlgmr.msra.gmra.mrb[8].mxu1 %vm841_vm2, %v1063_v28 }
 0x1ed   : > { %1908 = vmatpush3.bf16.xpose.msra.mxu1 %v1181_v29  ;;  %1909 = vmatprep.mubr.msk.bf16.mxu1 %vm2223_vm0, %v2222_v0 }
 0x1ee   : > { %1919 = vmatprep.subr.bf16.mxu1 %v2222_v0 }
 0x1f4   : > { %1910 = vmatmul.mubr.msk.bf16.vlgmr.msra.gmra.mrb[12].mxu1 %vm841_vm2, %v1174_v30 }
 0x1f5   : > { %1923 = vmatprep.mubr.msk.bf16.mxu1 %vm2223_vm0, %v2222_v0 }
 0x245   : > { %v882_v34 = vpop.f32.mrb[0].mxu1 }
 0x246   : > { %v888_v35 = vsel %vm2591_vm3, -1e+20, %v882_v34  ;;  %v1875_v36 = vpop.f32.mrb[1].mxu1 }
 0x247   : > { %v885_v37 = vpop.f32.mrb[2].mxu1  ;;  %v889_v38 = vsel %vm841_vm2, %v888_v35, -inf }
 0x248   : > { %890 = vmax.xlane.f32.xlu0 %v889_v38  ;;  %v1876_v39 = vpop.f32.mrb[3].mxu1 }
 0x2b7   : > { %v994_v46 = vpop.f32.mrb[4].mxu1 }
 0x2b8   : > { %v1000_v47 = vsel %vm2591_vm3, -1e+20, %v994_v46  ;;  %v1887_v48 = vpop.f32.mrb[5].mxu1 }
 0x2b9   : > { %v997_v49 = vpop.f32.mrb[6].mxu1  ;;  %v1001_v50 = vsel %vm841_vm2, %v1000_v47, -inf  ;;  %v2025_v48 = vld [vmem:[%s2768_s7] sm:$0xff]  }
 0x2ba   : > { %1002 = vmax.xlane.f32.xlu1 %v1001_v50  ;;  %v1888_v51 = vpop.f32.mrb[7].mxu1  ;;  %1920 = vmatpush3.bf16.msra.mxu1 %v2025_v48 }
 0x2bb   : > { %1921 = vmatprep.subr.bf16.mxu1 %v2222_v0 }
 0x2bf   : > { %v1106_v52 = vpop.f32.mrb[8].mxu1 }
 0x2c0   : > { %v1112_v53 = vsel %vm2591_vm3, -1e+20, %v1106_v52  ;;  %v1899_v54 = vpop.f32.mrb[9].mxu1 }
 0x2c1   : > { %v1109_v55 = vpop.f32.mrb[10].mxu1  ;;  %v1113_v56 = vsel %vm841_vm2, %v1112_v53, -inf }
 0x2c2   : > { %1114 = vmax.xlane.f32.xlu0 %v1113_v56  ;;  %v1900_v57 = vpop.f32.mrb[11].mxu1 }
 0x2c7   : > { %v1217_v58 = vpop.f32.mrb[12].mxu1 }
 0x2c8   : > { %v1223_v59 = vsel %vm2591_vm3, -1e+20, %v1217_v58  ;;  %v1911_v60 = vpop.f32.mrb[13].mxu1 }
 0x2c9   : > { %v1220_v61 = vpop.f32.mrb[14].mxu1  ;;  %v1224_v62 = vsel %vm841_vm2, %v1223_v59, -inf }
 0x2ca   : > { %1225 = vmax.xlane.f32.xlu0 %v1224_v62  ;;  %v1912_v63 = vpop.f32.mrb[15].mxu1 }
 0x2d5   : > { %v891_v1 = vpop.xlane.xlu0 %890 }
 0x2d6   : > { %v892_v2 = vsub.f32 %v888_v35, %v891_v1 }
 0x2d8   : > { %v893_v4 = vmul.f32 1.442695, %v892_v2 }
 0x2da   : > { %2037 = vpow2.f32 %v893_v4 }
 0x2e4   : > { %v2038_v5 = vpop.eup %2037 }
 0x2e5   : > { %v895_v6 = vsel %vm841_vm2, %v2038_v5, 0.0 }
 0x2e6   : > { %896 = vadd.xlane.f32.xlu1 %v895_v6 }
 0x2f7   : > { %1014 = vrot.lane.b32.xlu1 %v837_v41, %s2225_s20 }
 0x347   : > { %v1003_v7 = vpop.xlane.xlu1 %1002 }
 0x348   : > { %v1004_v8 = vsub.f32 %v1000_v47, %v1003_v7  ;;  %v1782_v7 = vld [vmem:[%s2769_s8] ss:$0 sm:$0xff] }
 0x34a   : > { %v1005_v9 = vmul.f32 1.442695, %v1004_v8 }
 0x34c   : > { %2039 = vpow2.f32 %v1005_v9 }
 0x34f   : > { %v1115_v10 = vpop.xlane.xlu0 %1114 }
 0x350   : > { %v1116_v11 = vsub.f32 %v1112_v53, %v1115_v10  ;;  %v2026_v53 = vld [vmem:[%s2768_s7 + $0x8] sm:$0xff]  }
 0x351   : > { %1922 = vmatpush3.bf16.msra.mxu1 %v2026_v53 }
 0x352   : > { %v1117_v12 = vmul.f32 1.442695, %v1116_v11  ;;  %1935 = vmatprep.subr.bf16.mxu1 %v2222_v0 }
 0x354   : > { %2041 = vpow2.f32 %v1117_v12 }
 0x356   : > { %v2040_v13 = vpop.eup %2039 }
 0x357   : > { %v1226_v14 = vpop.xlane.xlu0 %1225  ;;  %v1007_v15 = vsel %vm841_vm2, %v2040_v13, 0.0 }
 0x358   : > { %v1227_v16 = vsub.f32 %v1223_v59, %v1226_v14  ;;  %1008 = vadd.xlane.f32.xlu0 %v1007_v15 }
 0x35a   : > { %v1228_v17 = vmul.f32 1.442695, %v1227_v16 }
 0x35c   : > { %2043 = vpow2.f32 %v1228_v17 }
 0x35e   : > { %v2042_v18 = vpop.eup %2041 }
 0x35f   : > { %v1119_v19 = vsel %vm841_vm2, %v2042_v18, 0.0 }
 0x360   : > { %1120 = vadd.xlane.f32.xlu1 %v1119_v19 }
 0x366   : > { %v2044_v20 = vpop.eup %2043 }
 0x367   : > { %v1230_v21 = vsel %vm841_vm2, %v2044_v20, 0.0 }
 0x368   : > { %1231 = vadd.xlane.f32.xlu0 %v1230_v21  ;;  %v2028_v21 = vld [vmem:[%s2774_s13 + $0x8] sm:$0xff]  }
 0x371   : > { %1236 = vrot.lane.b32.xlu1 %v837_v41, %s2226_s26  ;;  %s2829_s26 = sld [smem:[#allocation22_spill]] }
 0x373   : > { %v897_v22 = vpop.xlane.xlu1 %896 }
 0x374   : > { %2045 = vrcp.f32 %v897_v22  ;;  %v2030_v22 = vld [vmem:[%s2776_s15 + $0x8] sm:$0xff]  }
 0x377   : > { %v1015_v24 = vpop.permute.xlu1 %1014 }
 0x378   : > { %v1020_v27 = vsel %vm904_vm4, %v1015_v24, 0  ;;  %v2032_v24 = vld [vmem:[%s2776_s15 + $0x18] sm:$0xff]  }
 0x37e   : > { %v2046_v23 = vpop.eup %2045  ;;  %1125 = vrot.lane.b32.xlu0 %v837_v41, %s2224_s18 }
 0x37f   : > { %v899_v25 = vmul.f32 %v2046_v23, %v2038_v5  ;;  %v2031_v23 = vld [vmem:[%s2776_s15 + $0x10] sm:$0xff]  }
 0x381   : > { %v900_v26 = vpack.c.bf16 %v899_v25, %v899_v25  ;;  %v2033_v25 = vld [vmem:[%s2776_s15 + $0x20] sm:$0xff]  }
 0x383   : > { %1880 = vmatmul.mubr.msk.bf16.vlgmr.msra.gmra.mrb[12].mxu0 %vm841_vm2, %v900_v26  ;;  %v2034_v26 = vld [vmem:[%s2776_s15 + $0x28] sm:$0xff]  }
 0x384   : > { %1890 = vmatpush3.bf16.msra.mxu0 %v1020_v27  ;;  %1891 = vmatprep.mubr.msk.bf16.mxu0 %vm2223_vm0, %v2222_v0 }
 0x385   : > { %1901 = vmatprep.subr.bf16.mxu0 %v2222_v0 }
 0x3e5   : > { %v1009_v28 = vpop.xlane.xlu0 %1008 }
 0x3e6   : > { %2047 = vrcp.f32 %v1009_v28 }
 0x3ed   : > { %v1121_v29 = vpop.xlane.xlu1 %1120 }
 0x3ee   : > { %2049 = vrcp.f32 %v1121_v29 }
 0x3f0   : > { %v2048_v30 = vpop.eup %2047 }
 0x3f1   : > { %v1011_v31 = vmul.f32 %v2048_v30, %v2040_v13  ;;  %v1237_v38 = vpop.permute.xlu1 %1236 }
 0x3f2   : > { %v1242_v40 = vsel %vm904_vm4, %v1237_v38, 0  ;;  %v2036_v38 = vld [vmem:[%s2776_s15 + $0x38] sm:$0xff]  }
 0x3f3   : > { %v1012_v32 = vpack.c.bf16 %v1011_v31, %v1011_v31  ;;  %v1786_v31 = vld [vmem:[%s2770_s9] ss:$0 sm:$0xff] }
 0x3f5   : > { %v1232_v33 = vpop.xlane.xlu0 %1231  ;;  %1892 = vmatmul.mubr.msk.bf16.vlgmr.msra.gmra.mrb[16].mxu0 %vm841_vm2, %v1012_v32 }
 0x3f6   : > { %2051 = vrcp.f32 %v1232_v33  ;;  %1903 = vmatprep.mubr.msk.bf16.mxu0 %vm2223_vm0, %v2222_v0  ;;  %v1787_v33 = vld [vmem:[%s2825_s0] ss:$0 sm:$0xff] }
 0x3f8   : > { %v2050_v34 = vpop.eup %2049 }
 0x3f9   : > { %v1123_v35 = vmul.f32 %v2050_v34, %v2042_v18  ;;  %v1126_v36 = vpop.permute.xlu0 %1125 }
 0x3fa   : > { %v1131_v37 = vsel %vm904_vm4, %v1126_v36, 0 }
 0x3fb   : > { %1902 = vmatpush3.bf16.msra.mxu0 %v1131_v37  ;;  %v1124_v39 = vpack.c.bf16 %v1123_v35, %v1123_v35  ;;  %v2035_v37 = vld [vmem:[%s2776_s15 + $0x30] sm:$0xff]  }
 0x3fc   : > { %1913 = vmatprep.subr.bf16.mxu0 %v2222_v0 }
 0x3fe   : > { %1904 = vmatmul.mubr.msk.bf16.vlgmr.msra.gmra.mrb[20].mxu0 %vm841_vm2, %v1124_v39 }
 0x3ff   : > { %1914 = vmatpush3.bf16.msra.mxu0 %v1242_v40  ;;  %1915 = vmatprep.mubr.msk.bf16.mxu0 %vm2223_vm0, %v2222_v0 }
 0x400   : > { %v2052_v41 = vpop.eup %2051  ;;  %1927 = vmatprep.subr.bf16.mxu0 %v2222_v0 }
 0x401   : > { %v1234_v42 = vmul.f32 %v2052_v41, %v2044_v20  ;;  %v2027_v20 = vld [vmem:[%s2774_s13] sm:$0xff]  }
 0x403   : > { %v1235_v43 = vpack.c.bf16 %v1234_v42, %v1234_v42 }
 0x406   : > { %1916 = vmatmul.mubr.msk.bf16.vlgmr.msra.gmra.mrb[24].mxu0 %vm841_vm2, %v1235_v43 }
 0x407   : > { %1931 = vmatprep.mubr.msk.bf16.mxu0 %vm2223_vm0, %v2222_v0  ;;  %1928 = vmatpush3.bf16.msra.mxu0 %v2027_v20 }
 0x408   : > { %1929 = vmatprep.subr.bf16.mxu0 %v2222_v0 }
 0x40b   : > { %1930 = vmatpush3.bf16.msra.mxu0 %v2028_v21 }
 0x456   : > { %v942_v44 = vpop.f32.mrb[12].mxu0 }
 0x457   : > { %v1881_v45 = vpop.f32.mrb[13].mxu0 }
 0x458   : > { %v945_v46 = vpop.f32.mrb[14].mxu0 }
 0x459   : > { %v1882_v47 = vpop.f32.mrb[15].mxu0 }
 0x4c8   : > { %v1056_v49 = vpop.f32.mrb[16].mxu0 }
 0x4c9   : > { %1285 = vrot.lane.b32.xlu1 %v1056_v49, %s2227_s24  ;;  %v1893_v50 = vpop.f32.mrb[17].mxu0  ;;  %s2826_s24 = sld [smem:[#allocation24_spill]] }
 0x4ca   : > { %v1059_v51 = vpop.f32.mrb[18].mxu0 }
 0x4cb   : > { %v1894_v52 = vpop.f32.mrb[19].mxu0 }
 0x4cf   : > { %v1788_v39 = vld [vmem:[%s2826_s24] ss:$0 sm:$0xff]  ;;  %s2831_s24 = sld [smem:[#allocation26_spill]] }
 0x4d1   : > { %v1167_v54 = vpop.f32.mrb[20].mxu0 }
 0x4d2   : > { %1289 = vrot.lane.b32.xlu0 %v1167_v54, %s2228_s2  ;;  %v1905_v55 = vpop.f32.mrb[21].mxu0  ;;  %s2827_s2 = sld [smem:[#allocation25_spill]] }
 0x4d3   : > { %v1170_v56 = vpop.f32.mrb[22].mxu0 }
 0x4d4   : > { %v1906_v57 = vpop.f32.mrb[23].mxu0 }
 0x4d5   : > { %s2832_s16 = smov %s2831_s24  ;;  %s2716_s30 = scalar_lea.hbm %s2831_s24, %s1804_s21 }
 0x4d9   : > { %v1278_v58 = vpop.f32.mrb[24].mxu0 }
 0x4da   : > { %1293 = vrot.lane.b32.xlu1 %v1278_v58, %s2229_s12  ;;  %v1917_v59 = vpop.f32.mrb[25].mxu0  ;;  %s1763_s12 = sshll.u32 %s2497_s11, 3 }
 0x4db   : > { %v1281_v60 = vpop.f32.mrb[26].mxu0  ;;  %s647_s19 = scalar_lea.vmem [#allocation8], %s1763_s12  ;;  %s2151_s12 = sshll.u32 %s2230_s28, 4  ;;  %s2152_s12 = int_to_ptr.vmem [resolvable:$false] %s2151_s12 }
 0x4dc   : > { %v1918_v61 = vpop.f32.mrb[27].mxu0  ;;  %s1625_s10 = sshll.u32 %s647_s19, 4  ;;  %s2153_s20 = scalar_lea.vmem %s2152_s12, 256  ;;  %s2718_s10 = int_to_ptr.vmem [resolvable:$true] %s1625_s10 }
 0x4dd   : > { %s2147_s18 = scalar_lea.vmem %s2718_s10, 128  ;;  %p2154_p0 = scmp.lt.s32.totalorder %s2718_s10, %s2152_s12 }
 0x4de   : > { %p2148_p7 = scmp.ne.s32.totalorder %s2718_s10, %s2147_s18  ;;  %p2155_p8 = scmp.lt.s32.totalorder %s2153_s20, %s2147_s18 }
 0x4e0   : > { %p2149_p6 = pnand %p2148_p7, %p2833_p9  ;;  %p2156_p10 = por %p2155_p8, %p2154_p0 }
 0x4e2   : > { %p2150_p12 = pneg %p2149_p6 }
 0x4e4   : > { %p2157_p11 = pnand %p2156_p10, %p2150_p12 }
 0x53b   : > { %v1286_v62 = vpop.permute.xlu1 %1285 }
 0x53c   : > { %v1296_v1 = vsel %vm841_vm2, %v942_v44, %v1286_v62 }
 0x544   : > { %v1290_v63 = vpop.permute.xlu0 %1289 }
 0x545   : > { %v1298_v2 = vsel %vm1297_vm5, %v1296_v1, %v1290_v63  ;;  %v1801_v63 = vld [vmem:[%s2829_s26] ss:$0 sm:$0xff] }
 0x54c   : > { %v1294_v4 = vpop.permute.xlu1 %1293 }
 0x54d   : > { %v1300_v5 = vsel %vm1299_vm6, %v1298_v2, %v1294_v4  ;;  %v1802_v2 = vld [vmem:[%s2830_s1] ss:$0 sm:$0xff] }
 0x54e   : > { %v1301_v6 = vpack.c.bf16 %v1300_v5, %v1300_v5 }
 0x550   : > { %1924 = vmatmul.mubr.msk.bf16.vlgmr.msra.gmra.mrb[16].mxu1 %vm673_vm1, %v1301_v6 }
 0x551   : > { %1951 = vmatprep.mubr.msk.bf16.mxu1 %vm2223_vm0, %v2222_v0 }
 0x623   : > { %v1362_v8 = vpop.f32.mrb[16].mxu1 }
 0x624   : > { %v1363_v9 = vadd.f32 %v1782_v7, %v1362_v8  ;;  %v1925_v10 = vpop.f32.mrb[17].mxu1 }
 0x625   : > { %v1365_v11 = vpop.f32.mrb[18].mxu1 }
 0x626   : > { %v1926_v12 = vpop.f32.mrb[19].mxu1  ;;  %v1369_v13 = vadd.f32 %v1363_v9, %v2531_v3  ;;  %v2029_v3 = vld [vmem:[%s2776_s15] sm:$0xff]  }
 0x627   : > { %1936 = vmatpush3.bf16.msra.mxu1 %v2029_v3 }
 0x628   : > { %v1372_v14 = vsel %vm673_vm1, %v1369_v13, 0.0  ;;  %1937 = vmatprep.subr.bf16.mxu1 %v2222_v0 }
 0x629   : > { %1373 = vadd.xlane.f32.xlu0 %v1372_v14 }
 0x62b   : > { %1938 = vmatpush3.bf16.msra.mxu1 %v2030_v22 }
 0x62c   : > { %1939 = vmatprep.subr.bf16.mxu1 %v2222_v0 }
 0x62f   : > { %1940 = vmatpush3.bf16.msra.mxu1 %v2031_v23 }
 0x630   : > { %1941 = vmatprep.subr.bf16.mxu1 %v2222_v0 }
 0x633   : > { %1942 = vmatpush3.bf16.msra.mxu1 %v2032_v24 }
 0x634   : > { %1943 = vmatprep.subr.bf16.mxu1 %v2222_v0 }
 0x637   : > { %1944 = vmatpush3.bf16.msra.mxu1 %v2033_v25 }
 0x638   : > { %1945 = vmatprep.subr.bf16.mxu1 %v2222_v0 }
 0x63b   : > { %1946 = vmatpush3.bf16.msra.mxu1 %v2034_v26 }
 0x63c   : > { %1947 = vmatprep.subr.bf16.mxu1 %v2222_v0 }
 0x63f   : > { %1948 = vmatpush3.bf16.msra.mxu1 %v2035_v37 }
 0x640   : > { %1949 = vmatprep.subr.bf16.mxu1 %v2222_v0  ;;  %v1792_v0 = vld [vmem:[%s2827_s2] ss:$0 sm:$0xff]  ;;  %s1612_s2 = scalar_lea.sflag [#allocation4], %s2497_s11 }
 0x643   : > { %1950 = vmatpush3.bf16.msra.mxu1 %v2036_v38 }
 0x6b6   : > { %v1374_v15 = vpop.xlane.xlu0 %1373 }
 0x6b7   : > { %v1376_v16 = vmul.f32 0.03125, %v1374_v15 }
 0x6b9   : > { %v1377_v17 = vsub.f32 %v1369_v13, %v1376_v16 }
 0x6bb   : > { %v1378_v18 = vmul.f32 %v1377_v17, %v1377_v17 }
 0x6bd   : > { %v1379_v19 = vsel %vm673_vm1, %v1378_v18, 0.0 }
 0x6be   : > { %1380 = vadd.xlane.f32.xlu1 %v1379_v19 }
 0x74b   : > { %v1381_v27 = vpop.xlane.xlu1 %1380 }
 0x74c   : > { %v1382_v28 = vmul.f32 0.03125, %v1381_v27 }
 0x74e   : > { %v1383_v29 = vadd.f32 1e-05, %v1382_v28 }
 0x750   : > { %2053 = vrsqrt.f32 %v1383_v29 }
 0x75a   : > { %v2054_v30 = vpop.eup %2053 }
 0x75b   : > { %v1385_v32 = vmul.f32 %v2054_v30, %v1377_v17 }
 0x75d   : > { %v1392_v34 = vmul.f32 %v1786_v31, %v1385_v32 }
 0x75f   : > { %v1399_v35 = vadd.f32 %v1787_v33, %v1392_v34 }
 0x761   : > { %v1400_v36 = vpack.c.bf16 %v1399_v35, %v1399_v35 }
 0x763   : > { %1932 = vmatmul.mubr.msk.bf16.vlgmr.msra.gmra.mrb[28].mxu0 %vm673_vm1, %v1400_v36 }
 0x836   : > { %v1461_v40 = vpop.f32.mrb[28].mxu0 }
 0x837   : > { %v1462_v41 = vadd.f32 %v1788_v39, %v1461_v40  ;;  %v1933_v42 = vpop.f32.mrb[29].mxu0 }
 0x838   : > { %v1464_v43 = vpop.f32.mrb[30].mxu0 }
 0x839   : > { %v1467_v44 = vmax.f32 %v1462_v41, 0.0  ;;  %v1934_v45 = vpop.f32.mrb[31].mxu0 }
 0x83b   : > { %v1468_v46 = vpack.c.bf16 %v1467_v44, %v1467_v44 }
 0x83d   : > { %1952 = vmatmul.mubr.bf16.vlgmr.msra.gmra.mrb[20].mxu1 %v1468_v46 }
 0x910   : > { %v1574_v47 = vpop.f32.mrb[20].mxu1 }
 0x911   : > { %v1575_v48 = vadd.f32 %v1792_v0, %v1574_v47  ;;  %v1953_v49 = vpop.f32.mrb[21].mxu1 }
 0x912   : > { %v1577_v50 = vpop.f32.mrb[22].mxu1 }
 0x913   : > { %v1954_v51 = vpop.f32.mrb[23].mxu1  ;;  %v1580_v52 = vadd.f32 %v1575_v48, %v1399_v35 }
 0x915   : > { %v1583_v53 = vsel %vm673_vm1, %v1580_v52, 0.0 }
 0x916   : > { %1584 = vadd.xlane.f32.xlu0 %v1583_v53 }
 0x9a3   : > { %v1585_v54 = vpop.xlane.xlu0 %1584 }
 0x9a4   : > { %v1586_v55 = vmul.f32 0.03125, %v1585_v54 }
 0x9a6   : > { %v1587_v56 = vsub.f32 %v1580_v52, %v1586_v55 }
 0x9a8   : > { %v1588_v57 = vmul.f32 %v1587_v56, %v1587_v56 }
 0x9aa   : > { %v1589_v58 = vsel %vm673_vm1, %v1588_v57, 0.0 }
 0x9ab   : > { %1590 = vadd.xlane.f32.xlu0 %v1589_v58 }
 0xa38   : > { %v1591_v59 = vpop.xlane.xlu0 %1590 }
 0xa39   : > { %v1592_v60 = vmul.f32 0.03125, %v1591_v59 }
 0xa3b   : > { %v1593_v61 = vadd.f32 1e-05, %v1592_v60 }
 0xa3d   : > { %2055 = vrsqrt.f32 %v1593_v61 }
 0xa47   : > { %v2056_v62 = vpop.eup %2055 }
 0xa48   : > { %v1595_v1 = vmul.f32 %v2056_v62, %v1587_v56 }
 0xa4a   : > { %v1602_v4 = vmul.f32 %v1801_v63, %v1595_v1 }
 0xa4c   : > { %v1609_v5 = vadd.f32 %v1802_v2, %v1602_v4 }
 0xa4e   : > { %1610 = vst.msk [vmem:[%s647_s19] sm:$0xff] %vm673_vm1, %v1609_v5 }
 0xa4f   : > { %2160 = shalt.err (!%p2157_p11)
}
 0xa50   : > { %s2161_s11 = scalar_lea.hbm %s2716_s30, 128  ;;  %s2165_s0 = scalar_lea.hbm %s2832_s16, 256 }
 0xa51   : > { %p2162_p4 = scmp.ne.s32.totalorder %s2716_s30, %s2161_s11  ;;  %p2166_p1 = scmp.lt.u32.totalorder %s2716_s30, %s2832_s16 }
 0xa52   : > { %p2167_p13 = scmp.lt.u32.totalorder %s2165_s0, %s2161_s11  ;;  %p2169_p7 = scmp.lt.u32.totalorder %s2161_s11, %s2716_s30 }
 0xa53   : > { %p2163_p3 = pnand %p2162_p4, %p2833_p9 }
 0xa54   : > { %p2168_p2 = por %p2167_p13, %p2166_p1 }
 0xa55   : > { %p2164_p5 = pneg %p2163_p3 }
 0xa56   : > { %p2170_p6 = por %p2169_p7, %p2168_p2 }
 0xa58   : > { %p2171_p12 = pnand %p2170_p6, %p2164_p5 }
 0xa5a   : > { %2174 = shalt.err (!%p2171_p12)
}
 0xa5b   : > { %1961 = dma.vmem_to_hbm [thread:$0]  (%p2833_p9), %s2718_s10, 128, %s2716_s30, %s1612_s2  }
 0xa5c PF: > { %s2834_s19 = sld [smem:[#allocation12_spill]]  ;;  %s2835_s14 = sld [smem:[#allocation17_spill]] }
 0xa5d   : > { %p2837_p8 = scmp.ge.s32.totalorder %s2217_s27, 2 }
 0xa62   : > { %s1637_s22 = sand.u32 1, %s2834_s19   ;;  %p2836_p0 = scmp.ne.s32.totalorder %s2835_s14, 0 }
 0xa63   : > { %s1638_s24 = scalar_lea.sflag [#allocation4], %s1637_s22 }
 0xa64   : > { %p1974_p10 = pnand %p2837_p8, %p2836_p0 }
 0xa66   : > { %2200 = dma.done.wait (!%p1974_p10), %s1638_s24, 128  }
 0xa67   : > { %2202 = vsyncadd (!%p1974_p10), %s1638_s24, 4294967168  ;;  %s2838_s27 = sld [smem:[#allocation14_spill]]  ;;  %s2839_s18 = sld [smem:[#allocation13_spill]] }
 0xa68   : > { %s2840_s26 = sld [smem:[#allocation15_spill]]  ;;  %s2841_s24 = smov %s2209_s25 }
 0xa6d   : > { %p33_p11 = scmp.ge.s32.totalorder %s2838_s27, 4   ;;  %s2842_s25 = smov %s2839_s18 }
 0xa6f   :  { %35 = sbr.rel (!%p33_p11) target bundleno = 17 (0x11), region = 160 }
 0xa76   :  { %1643 = vsyncpa [#allocation3], 1 }
 0xa77   :  { %1645 = vsyncpa [#allocation3 + $0x1], 1 }
 0xa78   :  { %1646 = vsyncpa [#allocation6], 1 }
 0xa79   :  { %1648 = vsyncpa [#allocation6 + $0x1], 1 }
 0xa7a   :  { %1649 = vsyncpa [#allocation4], 1 }
 0xa7b   :  { %1651 = vsyncpa [#allocation4 + $0x1], 1 }

</bundles_post_ra>
